<compile_context>
chip_gen: v5e
topology: v5e:2x2
jax: 0.10.0
libtpu: 0.0.40
codegen_flags: <defaults>
</compile_context>

<pallas_src>
import functools

import jax
import jax.numpy as jnp
from jax.experimental import pallas as pl
from jax.experimental.pallas import tpu as pltpu

_LANES = 128
_DEFAULT_BLOCK_ROWS = 8192            # 8192 rows * 128 lanes per step
_VMEM_STEP_INPUT_BUDGET = 8 * 1024 * 1024   # per-step input bytes (x2 buffers)
_VMEM_LIMIT_BYTES = 32 * 1024 * 1024        # safe on v5e/v6e/v7x
_MIN_PALLAS_ELEMENTS = 262144         # below this, fused XLA beats kernel launch


def _sigmoid_one_eup(z):
    # sigmoid(z) == 0.5 * tanh(z/2) + 0.5  -> a single EUP push per element.
    return 0.5 * jnp.tanh(0.5 * z) + 0.5


def _iu_partials_kernel(a_ref, il_ref, ul_ref, out_ref, *,
                        inter_alpha, inter_beta, union_alpha, union_beta,
                        rows, block_rows, need_mask):
    """One (block_rows, 128) slab -> four (128,) per-lane partial sums."""
    a = a_ref[...].astype(jnp.float32)    # attns
    il = il_ref[...].astype(jnp.float32)  # attns_inter_label
    ul = ul_ref[...].astype(jnp.float32)  # attns_union_label

    if need_mask:
        # Tail block only exists when rows % block_rows != 0; mask garbage rows
        # with a select (does NOT propagate NaNs from the unselected branch).
        base = pl.program_id(0) * block_rows
        row_ids = jax.lax.broadcasted_iota(jnp.int32, a.shape, 0) + base
        valid = row_ids < rows
        zero = jnp.zeros_like(a)
        a = jnp.where(valid, a, zero)
        il = jnp.where(valid, il, zero)
        ul = jnp.where(valid, ul, zero)

    # T_attns = sigmoid(inter_alpha * (attns - inter_beta));  beta is a scalar.
    t_a = _sigmoid_one_eup(inter_alpha * (a - inter_beta))
    # T_attns_union_label = sigmoid(union_alpha * (attns_union_label - union_beta))
    t_u = _sigmoid_one_eup(union_alpha * (ul - union_beta))

    # Per-lane partial sums (reduce over the sublane/row axis); the cheap
    # cross-lane / cross-block reduction happens once, in the wrapper.
    # Direct row writes -- no concatenate / stack in the epilogue.
    out_ref[0, 0] = jnp.sum(il * t_a, axis=0)  # numerator of loss_inter
    out_ref[0, 1] = jnp.sum(il, axis=0)        # denominator of loss_inter
    out_ref[0, 2] = jnp.sum(a * t_u, axis=0)   # numerator of loss_union
    out_ref[0, 3] = jnp.sum(a, axis=0)         # denominator of loss_union


def _pallas_partial_sums(attns, attns_inter_label, attns_union_label,
                         inter_alpha, inter_beta, union_alpha, union_beta,
                         block_rows):
    total = int(attns.size)
    rows = pl.cdiv(total, _LANES)

    dtypes = (attns.dtype, attns_inter_label.dtype, attns_union_label.dtype)
    # Sublane min-tile per dtype: f32 -> 8, bf16 -> 16, int8/bool -> 32.
    # All powers of two, so the LCM is the max.
    sub_mult = max(max(8, 32 // jnp.dtype(d).itemsize) for d in dtypes)
    per_row_bytes = _LANES * sum(jnp.dtype(d).itemsize for d in dtypes)

    # Block rows: requested size, capped by the data and by a per-step VMEM
    # budget (x2 pipeline buffers stays well inside vmem_limit_bytes on every
    # generation, including v7x's 64 MiB physical VMEM), rounded up to the
    # dtype sublane tile.
    bm_budget = max(sub_mult, _VMEM_STEP_INPUT_BUDGET // per_row_bytes)
    bm = min(int(block_rows), rows, bm_budget)
    bm = max(sub_mult, ((bm + sub_mult - 1) // sub_mult) * sub_mult)

    grid = pl.cdiv(rows, bm)
    need_mask = (rows % bm) != 0

    # Only the lane remainder (total % 128) is ever padded; the row tail is
    # masked in-kernel, so there is no whole-array HBM copy here.
    lane_pad = rows * _LANES - total

    def prep(x):
        x = x.reshape(-1)
        if lane_pad:
            # Zero padding is exact: every sum term has a padded-zero factor.
            x = jnp.pad(x, (0, lane_pad))
        return x.reshape(rows, _LANES)

    a2 = prep(attns)
    il2 = prep(attns_inter_label)
    ul2 = prep(attns_union_label)

    kernel = functools.partial(
        _iu_partials_kernel,
        inter_alpha=float(inter_alpha), inter_beta=float(inter_beta),
        union_alpha=float(union_alpha), union_beta=float(union_beta),
        rows=int(rows), block_rows=int(bm), need_mask=bool(need_mask))

    in_spec = pl.BlockSpec((bm, _LANES), lambda i: (i, 0))
    out_spec = pl.BlockSpec((1, 4, _LANES), lambda i: (i, 0, 0))

    bytes_accessed = int(a2.size * a2.dtype.itemsize
                         + il2.size * il2.dtype.itemsize
                         + ul2.size * ul2.dtype.itemsize
                         + grid * 4 * _LANES * 4)
    cost = pl.CostEstimate(flops=20 * rows * _LANES,
                           transcendentals=2 * rows * _LANES,
                           bytes_accessed=bytes_accessed)

    partials = pl.pallas_call(
        kernel,
        out_shape=jax.ShapeDtypeStruct((grid, 4, _LANES), jnp.float32),
        grid=(grid,),
        in_specs=[in_spec, in_spec, in_spec],
        out_specs=out_spec,
        compiler_params=pltpu.CompilerParams(
            dimension_semantics=("parallel",),
            vmem_limit_bytes=_VMEM_LIMIT_BYTES),
        cost_estimate=cost,
    )(a2, il2, ul2)

    # Collapse blocks and lanes -> the four global sums.
    return jnp.sum(partials, axis=(0, 2))  # (4,) float32


def _reference(attns, attns_inter_label, attns_union_label,
               inter_alpha, inter_beta, union_alpha, union_beta,
               smooth=1e-40):
    """Pure-JAX mirror of the PyTorch forward (scalar betas)."""
    n = attns.shape[0]
    a = attns.reshape(n, -1).astype(jnp.float32)
    il = attns_inter_label.reshape(n, -1).astype(jnp.float32)
    ul = attns_union_label.reshape(n, -1).astype(jnp.float32)
    t_a = 1.0 / (1.0 + jnp.exp(-inter_alpha * (a - inter_beta)))
    t_u = 1.0 / (1.0 + jnp.exp(-union_alpha * (ul - union_beta)))
    loss_inter = -jnp.sum(il * t_a) / (jnp.sum(il) + smooth)
    loss_union = -jnp.sum(a * t_u) / (jnp.sum(a) + smooth)
    return loss_inter + loss_union


def a_organs_iu_loss(attns, attns_inter_label, attns_union_label,
                     inter_alpha, inter_beta, union_alpha, union_beta,
                     smooth=1e-40, block_rows=_DEFAULT_BLOCK_ROWS,
                     use_pallas=None):
    # NOTE: the module default smooth=1e-40 is subnormal in float32 and flushes
    # to zero on TPU, so the guard is effectively inactive (same as the f32
    # reference). Pass e.g. smooth=1e-12 if an active guard is required.
    if use_pallas is None:
        use_pallas = int(attns.size) >= _MIN_PALLAS_ELEMENTS
    if not use_pallas:
        # Small inputs: fixed kernel/step overhead dominates; let XLA fuse it.
        return _reference(attns, attns_inter_label, attns_union_label,
                          inter_alpha, inter_beta, union_alpha, union_beta,
                          smooth)

    s = _pallas_partial_sums(attns, attns_inter_label, attns_union_label,
                             inter_alpha, inter_beta, union_alpha, union_beta,
                             block_rows)
    loss_inter = -(s[0] / (s[1] + smooth))
    loss_union = -(s[2] / (s[3] + smooth))
    return loss_inter + loss_union


if __name__ == "__main__":
    # Deterministic constructor parameters (synthetic, not from a checkpoint).
    inter_alpha, inter_beta = 10.0, 0.5
    union_alpha, union_beta = 10.0, 0.5

    key = jax.random.PRNGKey(0)
    k0, k1, k2 = jax.random.split(key, 3)

    # Attention matrices (heads, query, key). 8*96*80 = 61440 elems = 480 lane
    # rows; with block_rows=256 that gives a 2-step "parallel" grid whose last
    # block is partial, exercising the in-kernel tail masking path.
    n, h, w = 8, 96, 80
    attns = jax.nn.softmax(jax.random.normal(k0, (n, h, w), jnp.float32), axis=-1)
    # 0/1 masks are lossless in bf16 -> ship labels narrow to cut HBM traffic.
    # TODO(synk): if the label producer can emit int8/bool masks, pass those
    # straight through (cast at the source, not here) for another ~25% traffic cut.
    attns_inter_label = (jax.random.uniform(k1, (n, h, w)) > 0.5).astype(jnp.bfloat16)
    attns_union_label = (jax.random.uniform(k2, (n, h, w)) > 0.5).astype(jnp.bfloat16)

    loss = a_organs_iu_loss(attns, attns_inter_label, attns_union_label,
                            inter_alpha, inter_beta, union_alpha, union_beta,
                            block_rows=256, use_pallas=True)
    loss = jax.block_until_ready(loss)

    ref = _reference(attns, attns_inter_label, attns_union_label,
                     inter_alpha, inter_beta, union_alpha, union_beta)
    assert jnp.allclose(loss, ref, rtol=1e-4, atol=1e-5), (loss, ref)
    print("KERNEL_OK")
</pallas_src>

<mosaic_0001>
module attributes {stable_mosaic.version = 11 : i64} {
  func.func @_iu_partials_kernel(%arg0: i32, %arg1: memref<256x128xf32, #tpu.memory_space<vmem>>, %arg2: memref<256x128xbf16, #tpu.memory_space<vmem>>, %arg3: memref<256x128xbf16, #tpu.memory_space<vmem>>, %arg4: memref<1x4x128xf32, #tpu.memory_space<vmem>>) attributes {dimension_semantics = [#tpu.dimension_semantics<parallel>], iteration_bounds = array<i64: 2>, scalar_prefetch = 0 : i64, scratch_operands = 0 : i64, tpu.core_type = #tpu.core_type<tc>, window_params = [{transform_indices = @transform_0, window_bounds = array<i64: 256, 128>}, {transform_indices = @transform_1, window_bounds = array<i64: 256, 128>}, {transform_indices = @transform_2, window_bounds = array<i64: 256, 128>}, {transform_indices = @transform_3, window_bounds = array<i64: 1, 4, 128>}]} {
    %c0 = arith.constant 0 : index
    %c0_0 = arith.constant 0 : index
    %0 = vector.load %arg1[%c0, %c0_0] : memref<256x128xf32, #tpu.memory_space<vmem>>, vector<256x128xf32>
    %c0_1 = arith.constant 0 : index
    %c0_2 = arith.constant 0 : index
    %1 = vector.load %arg2[%c0_1, %c0_2] : memref<256x128xbf16, #tpu.memory_space<vmem>>, vector<256x128xbf16>
    %2 = arith.extf %1 : vector<256x128xbf16> to vector<256x128xf32>
    %c0_3 = arith.constant 0 : index
    %c0_4 = arith.constant 0 : index
    %3 = vector.load %arg3[%c0_3, %c0_4] : memref<256x128xbf16, #tpu.memory_space<vmem>>, vector<256x128xbf16>
    %4 = arith.extf %3 : vector<256x128xbf16> to vector<256x128xf32>
    %c256_i32 = arith.constant 256 : i32
    %5 = arith.muli %arg0, %c256_i32 : i32
    %6 = tpu.iota {dimensions = array<i32: 0>} : vector<256x128xi32>
    %7 = vector.broadcast %5 : i32 to vector<256x128xi32>
    %8 = arith.addi %6, %7 : vector<256x128xi32>
    %c480_i32 = arith.constant 480 : i32
    %9 = vector.broadcast %c480_i32 : i32 to vector<256x128xi32>
    %10 = arith.cmpi slt, %8, %9 : vector<256x128xi32>
    %cst = arith.constant 0.000000e+00 : f32
    %11 = vector.broadcast %cst : f32 to vector<256x128xf32>
    %12 = arith.select %10, %0, %11 : vector<256x128xi1>, vector<256x128xf32>
    %13 = arith.select %10, %2, %11 : vector<256x128xi1>, vector<256x128xf32>
    %14 = arith.select %10, %4, %11 : vector<256x128xi1>, vector<256x128xf32>
    %cst_5 = arith.constant 5.000000e-01 : f32
    %15 = vector.broadcast %cst_5 : f32 to vector<256x128xf32>
    %16 = arith.subf %12, %15 : vector<256x128xf32>
    %cst_6 = arith.constant 1.000000e+01 : f32
    %17 = vector.broadcast %cst_6 : f32 to vector<256x128xf32>
    %18 = arith.mulf %17, %16 : vector<256x128xf32>
    %cst_7 = arith.constant 5.000000e-01 : f32
    %19 = vector.broadcast %cst_7 : f32 to vector<256x128xf32>
    %20 = arith.mulf %19, %18 : vector<256x128xf32>
    %21 = math.tanh %20 : vector<256x128xf32>
    %cst_8 = arith.constant 5.000000e-01 : f32
    %22 = vector.broadcast %cst_8 : f32 to vector<256x128xf32>
    %23 = arith.mulf %22, %21 : vector<256x128xf32>
    %cst_9 = arith.constant 5.000000e-01 : f32
    %24 = vector.broadcast %cst_9 : f32 to vector<256x128xf32>
    %25 = arith.addf %23, %24 : vector<256x128xf32>
    %cst_10 = arith.constant 5.000000e-01 : f32
    %26 = vector.broadcast %cst_10 : f32 to vector<256x128xf32>
    %27 = arith.subf %14, %26 : vector<256x128xf32>
    %cst_11 = arith.constant 1.000000e+01 : f32
    %28 = vector.broadcast %cst_11 : f32 to vector<256x128xf32>
    %29 = arith.mulf %28, %27 : vector<256x128xf32>
    %cst_12 = arith.constant 5.000000e-01 : f32
    %30 = vector.broadcast %cst_12 : f32 to vector<256x128xf32>
    %31 = arith.mulf %30, %29 : vector<256x128xf32>
    %32 = math.tanh %31 : vector<256x128xf32>
    %cst_13 = arith.constant 5.000000e-01 : f32
    %33 = vector.broadcast %cst_13 : f32 to vector<256x128xf32>
    %34 = arith.mulf %33, %32 : vector<256x128xf32>
    %cst_14 = arith.constant 5.000000e-01 : f32
    %35 = vector.broadcast %cst_14 : f32 to vector<256x128xf32>
    %36 = arith.addf %34, %35 : vector<256x128xf32>
    %37 = arith.mulf %13, %25 : vector<256x128xf32>
    %cst_15 = arith.constant dense<0.000000e+00> : vector<128xf32>
    %38 = vector.multi_reduction <add>, %37, %cst_15 [0] : vector<256x128xf32> to vector<128xf32>
    %c0_16 = arith.constant 0 : index
    %c0_17 = arith.constant 0 : index
    %c0_18 = arith.constant 0 : index
    %39 = vector.load %arg4[%c0_16, %c0_17, %c0_18] : memref<1x4x128xf32, #tpu.memory_space<vmem>>, vector<1x1x128xf32>
    %40 = vector.shape_cast %39 : vector<1x1x128xf32> to vector<128xf32>
    %41 = vector.shape_cast %38 : vector<128xf32> to vector<1x1x128xf32>
    tpu.vector_store %arg4[%c0_16, %c0_17, %c0_18], %41 {strides = array<i32>} : memref<1x4x128xf32, #tpu.memory_space<vmem>>, vector<1x1x128xf32>,
    %cst_19 = arith.constant dense<0.000000e+00> : vector<128xf32>
    %42 = vector.multi_reduction <add>, %13, %cst_19 [0] : vector<256x128xf32> to vector<128xf32>
    %c0_20 = arith.constant 0 : index
    %c1 = arith.constant 1 : index
    %c0_21 = arith.constant 0 : index
    %43 = vector.load %arg4[%c0_20, %c1, %c0_21] : memref<1x4x128xf32, #tpu.memory_space<vmem>>, vector<1x1x128xf32>
    %44 = vector.shape_cast %43 : vector<1x1x128xf32> to vector<128xf32>
    %45 = vector.shape_cast %42 : vector<128xf32> to vector<1x1x128xf32>
    tpu.vector_store %arg4[%c0_20, %c1, %c0_21], %45 {strides = array<i32>} : memref<1x4x128xf32, #tpu.memory_space<vmem>>, vector<1x1x128xf32>,
    %46 = arith.mulf %12, %36 : vector<256x128xf32>
    %cst_22 = arith.constant dense<0.000000e+00> : vector<128xf32>
    %47 = vector.multi_reduction <add>, %46, %cst_22 [0] : vector<256x128xf32> to vector<128xf32>
    %c0_23 = arith.constant 0 : index
    %c2 = arith.constant 2 : index
    %c0_24 = arith.constant 0 : index
    %48 = vector.load %arg4[%c0_23, %c2, %c0_24] : memref<1x4x128xf32, #tpu.memory_space<vmem>>, vector<1x1x128xf32>
    %49 = vector.shape_cast %48 : vector<1x1x128xf32> to vector<128xf32>
    %50 = vector.shape_cast %47 : vector<128xf32> to vector<1x1x128xf32>
    tpu.vector_store %arg4[%c0_23, %c2, %c0_24], %50 {strides = array<i32>} : memref<1x4x128xf32, #tpu.memory_space<vmem>>, vector<1x1x128xf32>,
    %cst_25 = arith.constant dense<0.000000e+00> : vector<128xf32>
    %51 = vector.multi_reduction <add>, %12, %cst_25 [0] : vector<256x128xf32> to vector<128xf32>
    %c0_26 = arith.constant 0 : index
    %c3 = arith.constant 3 : index
    %c0_27 = arith.constant 0 : index
    %52 = vector.load %arg4[%c0_26, %c3, %c0_27] : memref<1x4x128xf32, #tpu.memory_space<vmem>>, vector<1x1x128xf32>
    %53 = vector.shape_cast %52 : vector<1x1x128xf32> to vector<128xf32>
    %54 = vector.shape_cast %51 : vector<128xf32> to vector<1x1x128xf32>
    tpu.vector_store %arg4[%c0_26, %c3, %c0_27], %54 {strides = array<i32>} : memref<1x4x128xf32, #tpu.memory_space<vmem>>, vector<1x1x128xf32>,
    return
  }
  func.func @transform_0(%arg0: i32) -> (i32, i32) {
    %c0_i32 = arith.constant 0 : i32
    %c0_i32_0 = arith.constant 0 : i32
    return %arg0, %c0_i32 : i32, i32
  }
  func.func @transform_1(%arg0: i32) -> (i32, i32) {
    %c0_i32 = arith.constant 0 : i32
    %c0_i32_0 = arith.constant 0 : i32
    return %arg0, %c0_i32 : i32, i32
  }
  func.func @transform_2(%arg0: i32) -> (i32, i32) {
    %c0_i32 = arith.constant 0 : i32
    %c0_i32_0 = arith.constant 0 : i32
    return %arg0, %c0_i32 : i32, i32
  }
  func.func @transform_3(%arg0: i32) -> (i32, i32, i32) {
    %c0_i32 = arith.constant 0 : i32
    %c0_i32_0 = arith.constant 0 : i32
    %c0_i32_1 = arith.constant 0 : i32
    return %arg0, %c0_i32, %c0_i32_0 : i32, i32, i32
  }
}

</mosaic_0001>

<bundles_post_ra>
// kernel: tpu_custom_call.1
= control target key start
LH: loop header
LB: loop body
LE: loop exit
PB: predicated region body
PF: predicated region fallthrough
CT: control target
= control target key end

     0   :  { %8 = vsyncpa [#allocation3], 0  ;;  %s3741_s0 = inlined_call_operand.hbm [shape: f32[480,128], index: 0, kind: input, shape index: {}]   ;;  %s3742_s1 = inlined_call_operand.hbm [shape: bf16[480,128], index: 1, kind: input, shape index: {}]   ;;  %s3743_s2 = inlined_call_operand.hbm [shape: bf16[480,128], index: 2, kind: input, shape index: {}]   ;;  %s3744_s3 = inlined_call_operand.hbm [shape: f32[2,4,128], index: 3, kind: output, shape index: {}]  }
   0x1   :  { %10 = vsyncpa [#allocation3 + $0x1], 0 }
   0x2   :  { %11 = vsyncpa [#allocation6], 0 }
   0x3   :  { %13 = vsyncpa [#allocation6 + $0x1], 0 }
   0x4   :  { %14 = vsyncpa [#allocation4], 0 }
   0x5   :  { %16 = vsyncpa [#allocation4 + $0x1], 0  ;;  %s2045_s12 = smov 0   ;;  %s2047_s13 = smov 0  }
   0x6   :  { %s2049_s14 = smov 0   ;;  %s2051_s15 = smov 0  }
   0x7 LB: > { %s2066_s16 = sadd.s32 4294967295, %s2014_s15   ;;  %s1392_s17 = sadd.s32 4294967294, %s2014_s15   ;;  %s2014_s15 = sphi %s2051_s15, %s4312_s15   ;;  %s2010_s14 = sphi %s2049_s14, %s4311_s14   ;;  %s2006_s13 = sphi %s2047_s13, %s4310_s13   ;;  %s2002_s12 = sphi %s2045_s12, %s4309_s12  }
   0x8   : > { %s2070_s18 = sadd.s32 1, %s2014_s15   ;;  %s29_s19 = sadd.s32 1, %s2010_s14 }
   0x9   : > { %s26_s20 = ssub.s32 %s2014_s15, %s2070_s18  ;;  %p36_p0 = scmp.ne.s32.totalorder %s2010_s14, %s2006_s13 }
   0xa   : > { %p27_p1 = scmp.eq.s32.totalorder %s26_s20, 0  ;;  %p37_p2 = scmp.eq.s32.totalorder %s2014_s15, 0 }
   0xb   : > { %p42_p3 = scmp.ne.s32.totalorder %s2006_s13, %s2002_s12  ;;  %p43_p4 = scmp.eq.s32.totalorder %s2066_s16, 0 }
   0xc   : > { %s2082_s21 = scalar_select %p27_p1, %s2010_s14, %s29_s19  }
   0xd   : > { %p2084_p5 = por %p37_p2, %p36_p0  ;;  %p2088_p6 = por %p43_p4, %p42_p3 }
   0xe   : > { %p118_p7 = scmp.eq.s32.totalorder %s2066_s16, 1  ;;  %p124_p8 = scmp.eq.s32.totalorder %s1392_s17, 1 }
   0xf   : > { %p3745_p11 = scmp.ge.s32.totalorder %s2014_s15, 2 }
  0x10   : > { %p2093_p9 = por %p118_p7, %p36_p0  ;;  %p2097_p10 = por %p124_p8, %p42_p3 }
  0x11   : > { %140 = sbr.rel (%p3745_p11) target bundleno = 130 (0x82), region = 16 }
  0x12   : > { %s3894_s25 = scalar_select %p2097_p10, 1, 0 }
  0x16   : > { %143 = sbr.rel (!%p2084_p5) target bundleno = 58 (0x3a), region = 20  ;;  %s144_s26 = sand.u32 (%p2084_p5), 1, %s2010_s14  }
  0x17   : > { %s1396_s27 = sshll.u32 (%p2084_p5), %s2014_s15, 5  ;;  %s1395_s28 = sshll.u32 (%p2084_p5), %s144_s26, 8 }
  0x18   : > { %s150_s29 = ssub.s32 (%p2084_p5), 60, %s1396_s27  ;;  %s2111_s6 = scalar_lea.sflag (%p2084_p5), [#allocation3], %s144_s26 }
  0x19   : > { %p151_p12 = scmp.lt.s32.totalorder (%p2084_p5), %s150_s29, 32  ;;  %s148_s7 = scalar_lea.vmem (%p2084_p5), [#allocation2], %s1395_s28 }
  0x1b   : > { %s4314_s29 = smov (!%p151_p12, %s150_s29), 32 }
  0x1c   : > { %s1397_s30 = sshll.u32 %s4314_s29, 3 }
  0x1d   : > { %s154_s4 = ssub.s32 256, %s1397_s30 }
  0x1e   : > { %s155_s5 = sshll.u32 %s154_s4, 4 }
  0x1f   : > { %156 = vsyncadd %s2111_s6, %s155_s5  ;;  %p2114_p13 = scmp.ne.s32.totalorder %s1397_s30, 0  ;;  %s1490_s9 = sshll.u32 %s2014_s15, 8 }
  0x20   : > { %s159_s17 = scalar_lea.hbm %s3741_s0, %s1490_s9  ;;  %s2122_s19 = sshll.u32 %s148_s7, 4  ;;  %s164_s19 = int_to_ptr.vmem [resolvable:$true] %s2122_s19 }
  0x21   : > { %s161_s20 = sshll.u32 %s159_s17, 4  ;;  %s1401_s26 = sshll.u32 %s4314_s29, 7  ;;  %s2125_s20 = int_to_ptr.hbm [resolvable:$true] %s161_s20 }
  0x22   : > { %s1827_s27 = sshra.s32 %s2125_s20, 4  ;;  %s1829_s28 = sshrl.u32 %s1401_s26, 4  ;;  %s1828_s27 = int_to_ptr.hbm [resolvable:$true] %s1827_s27 }
  0x23   : > { %s1834_s30 = scalar_lea.hbm %s1828_s27, %s1829_s28  ;;  %s1838_s7 = scalar_lea.hbm %s3741_s0, 480 }
  0x24   : > { %p1835_p0 = scmp.ne.s32.totalorder %s1828_s27, %s1834_s30  ;;  %p1839_p3 = scmp.lt.s32.totalorder %s1828_s27, %s3741_s0 }
  0x25   : > { %p1840_p4 = scmp.lt.s32.totalorder %s1838_s7, %s1834_s30 }
  0x26   : > { %p1836_p1 = pnand %p1835_p0, %p2114_p13 }
  0x27   : > { %p1841_p7 = por %p1840_p4, %p1839_p3 }
  0x28   : > { %p1837_p2 = pneg %p1836_p1 }
  0x2a   : > { %p1842_p8 = pnand %p1841_p7, %p1837_p2 }
  0x2c   : > { %1845 = shalt.err (!%p1842_p8)
}
  0x2d   : > { %s1846_s11 = sshra.s32 %s164_s19, 4  ;;  %s2016_s4 = smov [#allocation2]   ;;  %s1847_s11 = int_to_ptr.vmem [resolvable:$true] %s1846_s11 }
  0x2e   : > { %s1853_s17 = scalar_lea.vmem %s1847_s11, %s1829_s28  ;;  %s1857_s5 = scalar_lea.vmem %s2016_s4, 512 }
  0x2f   : > { %p1854_p12 = scmp.ne.s32.totalorder %s1847_s11, %s1853_s17  ;;  %p1859_p11 = scmp.lt.s32.totalorder %s1857_s5, %s1853_s17 }
  0x31   : > { %p1855_p0 = pnand %p1854_p12, %p2114_p13 }
  0x33   : > { %p1856_p1 = pneg %p1855_p0 }
  0x35   : > { %p1861_p10 = pnand %p1859_p11, %p1856_p1 }
  0x37   : > { %1864 = shalt.err (!%p1861_p10)
}
  0x38   : > { %s2017_s27 = smov 128   ;;  %s2018_s30 = smov 8  }
  0x39   : > { %169 = dma.hbm_to_vmem [thread:$0]  (%p2114_p13), %s2125_s20, %s1401_s26, %s164_s19, %s2111_s6, %s2017_s27, %s2017_s27, %s2018_s30  }
  0x3a PF: > { %172 = sbr.rel (!%p2084_p5) target bundleno = 94 (0x5e), region = 24  ;;  %s173_s28 = sand.u32 (%p2084_p5), 1, %s2014_s15  }
  0x3b   : > { %s175_s7 = sand.u32 (%p2084_p5), 1, %s2010_s14   ;;  %s1403_s10 = sshll.u32 (%p2084_p5), %s2014_s15, 5 }
  0x3c   : > { %s1402_s9 = sshll.u32 (%p2084_p5), %s175_s7, 7  ;;  %s179_s11 = ssub.s32 (%p2084_p5), 60, %s1403_s10 }
  0x3d   : > { %p180_p10 = scmp.lt.s32.totalorder (%p2084_p5), %s179_s11, 32  ;;  %s2159_s6 = scalar_lea.sflag (%p2084_p5), [#allocation6], %s173_s28 }
  0x3e   : > { %s177_s19 = scalar_lea.vmem (%p2084_p5), [#allocation5], %s1402_s9 }
  0x3f   : > { %s4316_s11 = smov (!%p180_p10, %s179_s11), 32 }
  0x40   : > { %s1404_s8 = sshll.u32 %s4316_s11, 2 }
  0x41   : > { %s183_s17 = ssub.s32 128, %s1404_s8 }
  0x42   : > { %s184_s29 = sshll.u32 %s183_s17, 4 }
  0x43   : > { %185 = vsyncadd %s2159_s6, %s184_s29  ;;  %p2162_p11 = scmp.ne.s32.totalorder %s1404_s8, 0  ;;  %s1491_s26 = sshll.u32 %s2014_s15, 7 }
  0x44   : > { %s188_s27 = scalar_lea.hbm %s3742_s1, %s1491_s26  ;;  %s2170_s30 = sshll.u32 %s177_s19, 4  ;;  %s193_s30 = int_to_ptr.vmem [resolvable:$true] %s2170_s30 }
  0x45   : > { %s190_s28 = sshll.u32 %s188_s27, 4  ;;  %s1408_s7 = sshll.u32 %s4316_s11, 6  ;;  %s2173_s28 = int_to_ptr.hbm [resolvable:$true] %s190_s28 }
  0x46   : > { %s1866_s9 = sshra.s32 %s2173_s28, 4  ;;  %s1868_s10 = sshrl.u32 %s1408_s7, 4  ;;  %s1867_s9 = int_to_ptr.hbm [resolvable:$true] %s1866_s9 }
  0x47   : > { %s1873_s8 = scalar_lea.hbm %s1867_s9, %s1868_s10  ;;  %s1877_s19 = scalar_lea.hbm %s3742_s1, 240 }
  0x48   : > { %p1874_p13 = scmp.ne.s32.totalorder %s1867_s9, %s1873_s8  ;;  %p1878_p4 = scmp.lt.s32.totalorder %s1867_s9, %s3742_s1 }
  0x49   : > { %p1879_p7 = scmp.lt.s32.totalorder %s1877_s19, %s1873_s8 }
  0x4a   : > { %p1875_p2 = pnand %p1874_p13, %p2162_p11 }
  0x4b   : > { %p1880_p8 = por %p1879_p7, %p1878_p4 }
  0x4c   : > { %p1876_p3 = pneg %p1875_p2 }
  0x4e   : > { %p1881_p12 = pnand %p1880_p8, %p1876_p3 }
  0x50   : > { %1884 = shalt.err (!%p1881_p12)
}
  0x51   : > { %s1885_s5 = sshra.s32 %s193_s30, 4  ;;  %s2019_s17 = smov [#allocation5]   ;;  %s1886_s5 = int_to_ptr.vmem [resolvable:$true] %s1885_s5 }
  0x52   : > { %s1892_s27 = scalar_lea.vmem %s1886_s5, %s1868_s10  ;;  %s1896_s29 = scalar_lea.vmem %s2019_s17, 256 }
  0x53   : > { %p1893_p0 = scmp.ne.s32.totalorder %s1886_s5, %s1892_s27  ;;  %p1898_p13 = scmp.lt.s32.totalorder %s1896_s29, %s1892_s27 }
  0x55   : > { %p1894_p1 = pnand %p1893_p0, %p2162_p11 }
  0x57   : > { %p1895_p10 = pneg %p1894_p1 }
  0x59   : > { %p1900_p2 = pnand %p1898_p13, %p1895_p10 }
  0x5b   : > { %1903 = shalt.err (!%p1900_p2)
}
  0x5c   : > { %s2020_s9 = smov 64   ;;  %s2021_s8 = smov 4  }
  0x5d   : > { %198 = dma.hbm_to_vmem [thread:$0]  (%p2162_p11), %s2173_s28, %s1408_s7, %s193_s30, %s2159_s6, %s2020_s9, %s2020_s9, %s2021_s8  }
  0x5e PF: > { %201 = sbr.rel (!%p2084_p5) target bundleno = 130 (0x82), region = 28  ;;  %s202_s10 = sand.u32 (%p2084_p5), 1, %s2014_s15  }
  0x5f   : > { %s204_s19 = sand.u32 (%p2084_p5), 1, %s2010_s14   ;;  %s1410_s4 = sshll.u32 (%p2084_p5), %s2014_s15, 5 }
  0x60   : > { %s1409_s26 = sshll.u32 (%p2084_p5), %s204_s19, 7  ;;  %s208_s5 = ssub.s32 (%p2084_p5), 60, %s1410_s4 }
  0x61   : > { %p209_p3 = scmp.lt.s32.totalorder (%p2084_p5), %s208_s5, 32  ;;  %s2207_s6 = scalar_lea.sflag (%p2084_p5), [#allocation6], %s202_s10 }
  0x62   : > { %s206_s22 = scalar_lea.vmem (%p2084_p5), [#allocation7], %s1409_s26 }
  0x63   : > { %s4318_s5 = smov (!%p209_p3, %s208_s5), 32 }
  0x64   : > { %s1411_s20 = sshll.u32 %s4318_s5, 2 }
  0x65   : > { %s212_s27 = ssub.s32 128, %s1411_s20 }
  0x66   : > { %s213_s11 = sshll.u32 %s212_s27, 4 }
  0x67   : > { %214 = vsyncadd %s2207_s6, %s213_s11  ;;  %p2210_p5 = scmp.ne.s32.totalorder %s1411_s20, 0  ;;  %s1492_s28 = sshll.u32 %s2014_s15, 7 }
  0x68   : > { %s217_s29 = scalar_lea.hbm %s3743_s2, %s1492_s28  ;;  %s2218_s9 = sshll.u32 %s206_s22, 4  ;;  %s222_s9 = int_to_ptr.vmem [resolvable:$true] %s2218_s9 }
  0x69   : > { %s219_s8 = sshll.u32 %s217_s29, 4  ;;  %s1415_s10 = sshll.u32 %s4318_s5, 6  ;;  %s2221_s8 = int_to_ptr.hbm [resolvable:$true] %s219_s8 }
  0x6a   : > { %s1905_s19 = sshra.s32 %s2221_s8, 4  ;;  %s1907_s26 = sshrl.u32 %s1415_s10, 4  ;;  %s1906_s19 = int_to_ptr.hbm [resolvable:$true] %s1905_s19 }
  0x6b   : > { %s1912_s4 = scalar_lea.hbm %s1906_s19, %s1907_s26  ;;  %s1916_s11 = scalar_lea.hbm %s3743_s2, 240 }
  0x6c   : > { %p1913_p11 = scmp.ne.s32.totalorder %s1906_s19, %s1912_s4  ;;  %p1917_p8 = scmp.lt.s32.totalorder %s1906_s19, %s3743_s2 }
  0x6d   : > { %p1918_p12 = scmp.lt.s32.totalorder %s1916_s11, %s1912_s4 }
  0x6e   : > { %p1914_p4 = pnand %p1913_p11, %p2210_p5 }
  0x6f   : > { %p1919_p0 = por %p1918_p12, %p1917_p8 }
  0x70   : > { %p1915_p7 = pneg %p1914_p4 }
  0x72   : > { %p1920_p1 = pnand %p1919_p0, %p1915_p7 }
  0x74   : > { %1923 = shalt.err (!%p1920_p1)
}
  0x75   : > { %s1924_s7 = sshra.s32 %s222_s9, 4  ;;  %s2022_s29 = smov [#allocation7]   ;;  %s1925_s7 = int_to_ptr.vmem [resolvable:$true] %s1924_s7 }
  0x76   : > { %s1931_s17 = scalar_lea.vmem %s1925_s7, %s1907_s26  ;;  %s1935_s20 = scalar_lea.vmem %s2022_s29, 256 }
  0x77   : > { %p1932_p10 = scmp.ne.s32.totalorder %s1925_s7, %s1931_s17  ;;  %p1937_p3 = scmp.lt.s32.totalorder %s1935_s20, %s1931_s17 }
  0x79   : > { %p1933_p13 = pnand %p1932_p10, %p2210_p5 }
  0x7b   : > { %p1934_p2 = pneg %p1933_p13 }
  0x7d   : > { %p1939_p11 = pnand %p1937_p3, %p1934_p2 }
  0x7f   : > { %1942 = shalt.err (!%p1939_p11)
}
  0x80   : > { %s2023_s19 = smov 64   ;;  %s2024_s4 = smov 4  }
  0x81   : > { %227 = dma.hbm_to_vmem [thread:$0]  (%p2210_p5), %s2221_s8, %s1415_s10, %s222_s9, %s2207_s6, %s2023_s19, %s2023_s19, %s2024_s4  }
  0x82 PF: > { %p1416_p4 = scmp.ge.s32.totalorder %s2014_s15, 1  ;;  %p229_p7 = scmp.lt.s32.totalorder %s2014_s15, 3 }
  0x84   : > { %p230_p8 = pnand %p1416_p4, %p229_p7 }
  0x86   : > { %233 = sbr.rel (%p230_p8) target bundleno = 433 (0x1b1), region = 32 }
  0x8b   : > { %s2250_s26 = sand.u32 1, %s2006_s13  }
  0x8c   : > { %s1417_s27 = sshll.u32 %s2250_s26, 8  ;;  %s236_s11 = scalar_lea.sflag [#allocation3], %s2250_s26 }
  0x8d   : > { %s2254_s30 = scalar_lea.vmem [#allocation2], %s1417_s27 }
  0x8e   : > { %1989 = dma.done.wait (%p2088_p6), %s236_s11, 4096  }
  0x8f   : > { %1991 = vsyncadd (%p2088_p6), %s236_s11, 4294963200  ;;  %s245_s5 = sand.u32 1, %s2066_s16   ;;  %s1418_s6 = sshll.u32 %s2250_s26, 7 }
  0x90   : > { %s246_s9 = scalar_lea.sflag [#allocation6], %s245_s5  ;;  %s2264_s8 = scalar_lea.vmem [#allocation5], %s1418_s6 }
  0x91   : > { %1993 = dma.done.wait (%p2088_p6), %s246_s9, 4096  }
  0x92   : > { %1995 = vsyncadd (%p2088_p6), %s246_s9, 4294963200  ;;  %v469_v0 = vlaneseq  ;;  %s1421_s10 = sshll.u32 %s2066_s16, 8  ;;  %v2314_v44 = vld [vmem:[%s2264_s8] sm:$0xff]   ;;  %v2329_v49 = vld [vmem:[%s2264_s8 + $0x8] sm:$0xff]   ;;  %s2437_s23 = scalar_lea.vmem [#allocation7], %s1418_s6 }
  0x93   : > { %v2271_v3 = vstv %s1421_s10  ;;  %v2344_v54 = vld [vmem:[%s2264_s8 + $0x10] sm:$0xff]   ;;  %v2347_v55 = vld [vmem:[%s2264_s8 + $0x18] sm:$0xff]   ;;  %v2363_v61 = vld [vmem:[%s2264_s8 + $0x20] sm:$0xff]   ;;  %s1420_s22 = sshll.u32 %s2250_s26, 2  ;;  %s1487_s7 = sshll.u32 %s2066_s16, 2 }
  0x94   : > { %v470_v1 = vshrl.u32 %v469_v0, 7  ;;  %3898 = vst [vmem:[#allocation12_spill] sm:$0xff] %v2363_v61  ;;  %v2366_v62 = vld [vmem:[%s2264_s8 + $0x28] sm:$0xff]   ;;  %v2513_v60 = vld [vmem:[%s2437_s23 + $0x78] sm:$0xff]   ;;  %s3691_s28 = scalar_lea.vmem [#allocation8], %s1420_s22  ;;  %s1274_s20 = scalar_lea.hbm %s3744_s3, %s1487_s7 }
  0x95   : > { %3899 = vst [vmem:[#allocation13_spill] sm:$0xff] %v2366_v62  ;;  %s1276_s19 = sshll.u32 %s3691_s28, 4  ;;  %s1278_s4 = sshll.u32 %s1274_s20, 4  ;;  %s1277_s19 = int_to_ptr.vmem [resolvable:$true] %s1276_s19  ;;  %s1279_s4 = int_to_ptr.hbm [resolvable:$true] %s1278_s4 }
  0x96   : > { %v471_v2 = vadd.s32 8, %v470_v1  ;;  %v472_v4 = vadd.s32 16, %v470_v1  ;;  %v473_v5 = vadd.s32 24, %v470_v1  ;;  %v474_v6 = vadd.s32 32, %v470_v1  ;;  %3925 = vst [vmem:[#allocation39_spill] sm:$0xff] %v2513_v60  ;;  %v319_v60 = vld [vmem:[%s2254_s30 + $0x58] sm:$0xff] }
  0x97   : > { %v475_v7 = vadd.s32 40, %v470_v1  ;;  %v476_v8 = vadd.s32 48, %v470_v1  ;;  %v477_v9 = vadd.s32 56, %v470_v1  ;;  %v478_v10 = vadd.s32 64, %v470_v1  ;;  %s1264_s16 = scalar_lea.sflag [#allocation4], %s2250_s26  ;;  %s1958_s27 = sshra.s32 %s1279_s4, 4  ;;  %s1959_s27 = int_to_ptr.hbm [resolvable:$true] %s1958_s27 }
  0x98   : > { %v479_v11 = vadd.s32 72, %v470_v1  ;;  %v480_v12 = vadd.s32 80, %v470_v1  ;;  %v481_v13 = vadd.s32 88, %v470_v1  ;;  %v482_v14 = vadd.s32 96, %v470_v1  ;;  %s1960_s11 = scalar_lea.hbm %s1959_s27, 4  ;;  %s1964_s6 = scalar_lea.hbm %s3744_s3, 8 }
  0x99   : > { %v483_v15 = vadd.s32 104, %v470_v1  ;;  %v484_v16 = vadd.s32 112, %v470_v1  ;;  %v485_v17 = vadd.s32 120, %v470_v1  ;;  %v486_v18 = vadd.s32 128, %v470_v1  ;;  %p1961_p6 = scmp.ne.s32.totalorder %s1959_s27, %s1960_s11  ;;  %p1965_p0 = scmp.lt.s32.totalorder %s1959_s27, %s3744_s3 }
  0x9a   : > { %v2274_v19 = vadd.s32 %v2271_v3, %v470_v1  ;;  %v487_v20 = vadd.s32 136, %v470_v1  ;;  %v488_v21 = vadd.s32 144, %v470_v1  ;;  %v489_v22 = vadd.s32 152, %v470_v1  ;;  %p1966_p1 = scmp.lt.s32.totalorder %s1964_s6, %s1960_s11 }
  0x9b   : > { %v2277_v23 = vadd.s32 %v2271_v3, %v471_v2  ;;  %v490_v24 = vadd.s32 160, %v470_v1  ;;  %v491_v25 = vadd.s32 168, %v470_v1  ;;  %v492_v26 = vadd.s32 176, %v470_v1  ;;  %v2473_v2 = vld [vmem:[%s2437_s23 + $0x38] sm:$0xff]   ;;  %p1962_p5 = pnand %p1961_p6, %p2093_p9 }
  0x9c   : > { %v2280_v27 = vadd.s32 %v2271_v3, %v472_v4  ;;  %v493_v28 = vadd.s32 184, %v470_v1  ;;  %v494_v29 = vadd.s32 192, %v470_v1  ;;  %v495_v30 = vadd.s32 200, %v470_v1  ;;  %3917 = vst [vmem:[#allocation31_spill] sm:$0xff] %v2473_v2  ;;  %v314_v4 = vld [vmem:[%s2254_s30 + $0x30] sm:$0xff]  ;;  %v315_v2 = vld [vmem:[%s2254_s30 + $0x38] sm:$0xff]  ;;  %p1967_p10 = por %p1966_p1, %p1965_p0 }
  0x9d   : > { %v2283_v31 = vadd.s32 %v2271_v3, %v473_v5  ;;  %v496_v32 = vadd.s32 208, %v470_v1  ;;  %v2285_v33 = vadd.s32 216, %v470_v1  ;;  %v2287_v34 = vadd.s32 224, %v470_v1  ;;  %v2380_v5 = vld [vmem:[%s2264_s8 + $0x30] sm:$0xff]   ;;  %p1963_p12 = pneg %p1962_p5 }
  0x9e   : > { %v2290_v35 = vadd.s32 %v2271_v3, %v474_v6  ;;  %v2292_v36 = vadd.s32 232, %v470_v1  ;;  %v2294_v37 = vadd.s32 240, %v470_v1  ;;  %v2296_v38 = vadd.s32 248, %v470_v1  ;;  %3900 = vst [vmem:[#allocation14_spill] sm:$0xff] %v2380_v5  ;;  %v2383_v6 = vld [vmem:[%s2264_s8 + $0x38] sm:$0xff]  }
  0x9f   : > { %v2299_v39 = vadd.s32 %v2271_v3, %v475_v7  ;;  %v2302_v40 = vadd.s32 %v2271_v3, %v476_v8  ;;  %v2305_v41 = vadd.s32 %v2271_v3, %v477_v9  ;;  %v2308_v42 = vadd.s32 %v2271_v3, %v478_v10  ;;  %3901 = vst [vmem:[#allocation15_spill] sm:$0xff] %v2383_v6  ;;  %v2463_v9 = vld [vmem:[%s2437_s23 + $0x28] sm:$0xff]   ;;  %v330_v6 = vld [vmem:[%s2254_s30 + $0xb0] sm:$0xff]  ;;  %v331_v5 = vld [vmem:[%s2254_s30 + $0xb8] sm:$0xff]  ;;  %p1968_p13 = pnand %p1967_p10, %p1963_p12 }
  0xa0   : > { %v2311_v43 = vadd.s32 %v2271_v3, %v479_v11  ;;  %v2317_v45 = vadd.s32 %v2271_v3, %v480_v12  ;;  %v2320_v46 = vadd.s32 %v2271_v3, %v481_v13  ;;  %v2323_v47 = vadd.s32 %v2271_v3, %v482_v14  ;;  %v2396_v13 = vld [vmem:[%s2264_s8 + $0x40] sm:$0xff]   ;;  %v2399_v14 = vld [vmem:[%s2264_s8 + $0x48] sm:$0xff]   ;;  %3915 = vst [vmem:[#allocation29_spill] sm:$0xff] %v2463_v9  ;;  %v2470_v11 = vld [vmem:[%s2437_s23 + $0x30] sm:$0xff]  }
  0xa1   : > { %v2326_v48 = vadd.s32 %v2271_v3, %v483_v15  ;;  %v2332_v50 = vadd.s32 %v2271_v3, %v484_v16  ;;  %v2335_v51 = vadd.s32 %v2271_v3, %v485_v17  ;;  %v2338_v52 = vadd.s32 %v2271_v3, %v486_v18  ;;  %3902 = vst [vmem:[#allocation16_spill] sm:$0xff] %v2396_v13  ;;  %v2429_v16 = vld [vmem:[%s2264_s8 + $0x78] sm:$0xff]   ;;  %v2440_v17 = vld [vmem:[%s2437_s23] sm:$0xff]   ;;  %v2443_v18 = vld [vmem:[%s2437_s23 + $0x8] sm:$0xff]  }
  0xa2   : > { %v2341_v53 = vadd.s32 %v2271_v3, %v487_v20  ;;  %v2350_v56 = vadd.s32 %v2271_v3, %v488_v21  ;;  %v2353_v57 = vadd.s32 %v2271_v3, %v489_v22  ;;  %v2356_v58 = vadd.s32 %v2271_v3, %v490_v24  ;;  %3903 = vst [vmem:[#allocation17_spill] sm:$0xff] %v2399_v14  ;;  %v2406_v20 = vld [vmem:[%s2264_s8 + $0x50] sm:$0xff]   ;;  %v2409_v21 = vld [vmem:[%s2264_s8 + $0x58] sm:$0xff]   ;;  %v2460_v24 = vld [vmem:[%s2437_s23 + $0x20] sm:$0xff]  }
  0xa3   : > { %v2359_v59 = vadd.s32 %v2271_v3, %v491_v25  ;;  %v2369_v63 = vadd.s32 %v2271_v3, %v492_v26  ;;  %v2372_v0 = vadd.s32 %v2271_v3, %v493_v28  ;;  %v2375_v1 = vadd.s32 %v2271_v3, %v494_v29  ;;  %3904 = vst [vmem:[#allocation18_spill] sm:$0xff] %v2406_v20  ;;  %v2416_v28 = vld [vmem:[%s2264_s8 + $0x60] sm:$0xff]   ;;  %v2419_v29 = vld [vmem:[%s2264_s8 + $0x68] sm:$0xff]   ;;  %v2426_v22 = vld [vmem:[%s2264_s8 + $0x70] sm:$0xff]  }
  0xa4   : > { %v2386_v7 = vadd.s32 %v2271_v3, %v495_v30  ;;  %v2389_v8 = vadd.s32 %v2271_v3, %v496_v32  ;;  %3905 = vst [vmem:[#allocation19_spill] sm:$0xff] %v2409_v21  ;;  %v2450_v32 = vld [vmem:[%s2437_s23 + $0x10] sm:$0xff]   ;;  %v2453_v30 = vld [vmem:[%s2437_s23 + $0x18] sm:$0xff]   ;;  %v2480_v15 = vld [vmem:[%s2437_s23 + $0x40] sm:$0xff]   ;;  %v2530_v10 = vadd.s32 %v2271_v3, %v2285_v33  ;;  %v2546_v26 = vadd.s32 %v2271_v3, %v2296_v38 }
  0xa5   : > { %3906 = vst [vmem:[#allocation20_spill] sm:$0xff] %v2416_v28  ;;  %v2490_v25 = vld [vmem:[%s2437_s23 + $0x50] sm:$0xff]   ;;  %v2503_v12 = vld [vmem:[%s2437_s23 + $0x68] sm:$0xff]   ;;  %vm535_vm0 = vcmp.lt.s32.totalorder %v2274_v19, 480  ;;  %vm536_vm1 = vcmp.lt.s32.totalorder %v2277_v23, 480  ;;  %vm537_vm2 = vcmp.lt.s32.totalorder %v2280_v27, 480 }
  0xa6   : > { %3907 = vst [vmem:[#allocation21_spill] sm:$0xff] %v2419_v29  ;;  %v2510_v29 = vld [vmem:[%s2437_s23 + $0x70] sm:$0xff]   ;;  %vm538_vm3 = vcmp.lt.s32.totalorder %v2283_v31, 480  ;;  %vm3804_vm4 = vcmp.lt.s32.totalorder %v2290_v35, 480  ;;  %vm3807_vm5 = vcmp.lt.s32.totalorder %v2299_v39, 480  ;;  %vm3808_vm6 = vcmp.lt.s32.totalorder %v2302_v40, 480 }
  0xa7   : > { %3908 = vst [vmem:[#allocation22_spill] sm:$0xff] %v2426_v22  ;;  %vm3810_vm7 = vcmp.lt.s32.totalorder %v2305_v41, 480  ;;  %vm3811_vm8 = vcmp.lt.s32.totalorder %v2308_v42, 480  ;;  %v309_v33 = vld [vmem:[%s2254_s30 + $0x8] sm:$0xff]  ;;  %v316_v22 = vld [vmem:[%s2254_s30 + $0x40] sm:$0xff]  ;;  %vm558_vm10 = vcmp.lt.s32.totalorder %v2372_v0, 480 }
  0xa8   : > { %3909 = vst [vmem:[#allocation23_spill] sm:$0xff] %v2429_v16  ;;  %v2483_v16 = vld [vmem:[%s2437_s23 + $0x48] sm:$0xff]   ;;  %vm561_vm15 = vcmp.lt.s32.totalorder %v2389_v8, 480  ;;  %vm562_vm14 = vcmp.lt.s32.totalorder %v2530_v10, 480  ;;  %v326_v9 = vld [vmem:[%s2254_s30 + $0x90] sm:$0xff]  ;;  %v327_v28 = vld [vmem:[%s2254_s30 + $0x98] sm:$0xff] }
  0xa9   : > { %3910 = vst [vmem:[#allocation24_spill] sm:$0xff] %v2440_v17  ;;  %v2493_v17 = vld [vmem:[%s2437_s23 + $0x58] sm:$0xff]   ;;  %v313_v38 = vld [vmem:[%s2254_s30 + $0x28] sm:$0xff]  ;;  %v328_v21 = vld [vmem:[%s2254_s30 + $0xa0] sm:$0xff]  ;;  %vm566_vm13 = vcmp.lt.s32.totalorder %v2546_v26, 480  ;;  %v2608_v13 = vsel %vm536_vm1, %v309_v33, 0.0 }
  0xaa   : > { %3911 = vst [vmem:[#allocation25_spill] sm:$0xff] %v2443_v18  ;;  %v317_v18 = vld [vmem:[%s2254_s30 + $0x48] sm:$0xff]  ;;  %v2626_v33 = vsel %vm3807_vm5, %v313_v38, 0.0  ;;  %vm3937_vm5 = vcmp.lt.s32.totalorder %v2317_v45, 480  ;;  %v4155_v8 = vld [vmem:[#allocation39_spill] sm:$0xff] }
  0xab   : > { %3912 = vst [vmem:[#allocation26_spill] sm:$0xff] %v2450_v32  ;;  %v2542_v32 = vadd.s32 %v2271_v3, %v2294_v37  ;;  %v312_v37 = vld [vmem:[%s2254_s30 + $0x20] sm:$0xff]  ;;  %v329_v20 = vld [vmem:[%s2254_s30 + $0xa8] sm:$0xff]  ;;  %v4158_v10 = vunpack.c.h.bf16 %v4155_v8 }
  0xac   : > { %3913 = vst [vmem:[#allocation27_spill] sm:$0xff] %v2453_v30  ;;  %v2500_v30 = vld [vmem:[%s2437_s23 + $0x60] sm:$0xff]  }
  0xad   : > { %3914 = vst [vmem:[#allocation28_spill] sm:$0xff] %v2460_v24  ;;  %v2534_v24 = vadd.s32 %v2271_v3, %v2287_v34  ;;  %v310_v34 = vld [vmem:[%s2254_s30 + $0x10] sm:$0xff]  ;;  %vm565_vm12 = vcmp.lt.s32.totalorder %v2542_v32, 480 }
  0xae   : > { %3916 = vst [vmem:[#allocation30_spill] sm:$0xff] %v2470_v11  ;;  %v318_v11 = vld [vmem:[%s2254_s30 + $0x50] sm:$0xff]  ;;  %v2614_v62 = vsel %vm537_vm2, %v310_v34, 0.0  ;;  %v2632_v34 = vsel %vm3808_vm6, %v314_v4, 0.0  ;;  %vm3939_vm6 = vcmp.lt.s32.totalorder %v2320_v46, 480 }
  0xaf   : > { %3918 = vst [vmem:[#allocation32_spill] sm:$0xff] %v2480_v15  ;;  %v2538_v15 = vadd.s32 %v2271_v3, %v2292_v36  ;;  %v308_v3 = vld [vmem:[%s2254_s30] sm:$0xff]  ;;  %v311_v36 = vld [vmem:[%s2254_s30 + $0x18] sm:$0xff]  ;;  %vm563_vm9 = vcmp.lt.s32.totalorder %v2534_v24, 480  ;;  %v2650_v4 = vsel %vm3937_vm5, %v318_v11, 0.0  ;;  %vm3947_vm5 = vcmp.lt.s32.totalorder %v2335_v51, 480 }
  0xb0   : > { %3919 = vst [vmem:[#allocation33_spill] sm:$0xff] %v2483_v16  ;;  %v325_v16 = vld [vmem:[%s2254_s30 + $0x88] sm:$0xff]  ;;  %v2604_v14 = vsel %vm535_vm0, %v308_v3, 0.0  ;;  %v2618_v61 = vsel %vm538_vm3, %v311_v36, 0.0  ;;  %v2622_v3 = vsel %vm3804_vm4, %v312_v37, 0.0  ;;  %v2636_v36 = vsel %vm3810_vm7, %v315_v2, 0.0 }
  0xb1   : > { %3920 = vst [vmem:[#allocation34_spill] sm:$0xff] %v2490_v25  ;;  %v324_v25 = vld [vmem:[%s2254_s30 + $0x80] sm:$0xff]  ;;  %vm564_vm11 = vcmp.lt.s32.totalorder %v2538_v15, 480  ;;  %v2640_v37 = vsel %vm3811_vm8, %v316_v22, 0.0  ;;  %vm3935_vm4 = vcmp.lt.s32.totalorder %v2311_v43, 480  ;;  %vm3941_vm7 = vcmp.lt.s32.totalorder %v2323_v47, 480 }
  0xb2   : > { %3921 = vst [vmem:[#allocation35_spill] sm:$0xff] %v2493_v17  ;;  %v323_v17 = vld [vmem:[%s2254_s30 + $0x78] sm:$0xff]  ;;  %v2644_v38 = vsel %vm3935_vm4, %v317_v18, 0.0  ;;  %vm3943_vm8 = vcmp.lt.s32.totalorder %v2326_v48, 480  ;;  %v336_v18 = vld [vmem:[%s2254_s30 + $0xe0] sm:$0xff]  ;;  %vm3945_vm4 = vcmp.lt.s32.totalorder %v2332_v50, 480 }
  0xb3   : > { %3922 = vst [vmem:[#allocation36_spill] sm:$0xff] %v2500_v30  ;;  %v322_v30 = vld [vmem:[%s2254_s30 + $0x70] sm:$0xff]  ;;  %v2672_v11 = vsel %vm3947_vm5, %v323_v17, 0.0  ;;  %vm3957_vm5 = vcmp.lt.s32.totalorder %v2356_v58, 480  ;;  %v4077_v19 = vld [vmem:[#allocation26_spill] sm:$0xff]  ;;  %v4082_v27 = vld [vmem:[#allocation27_spill] sm:$0xff] }
  0xb4   : > { %3923 = vst [vmem:[#allocation37_spill] sm:$0xff] %v2503_v12  ;;  %v321_v12 = vld [vmem:[%s2254_s30 + $0x68] sm:$0xff]  ;;  %v2694_v17 = vsel %vm3957_vm5, %v328_v21, 0.0  ;;  %vm3983_vm5 = vcmp.lt.s32.totalorder %v2290_v35, 480  ;;  %v4080_v23 = vunpack.c.h.bf16 %v4077_v19  ;;  %v4085_v31 = vunpack.c.h.bf16 %v4082_v27 }
  0xb5   : > { %3924 = vst [vmem:[#allocation38_spill] sm:$0xff] %v2510_v29  ;;  %v320_v29 = vld [vmem:[%s2254_s30 + $0x60] sm:$0xff]  ;;  %v2662_v22 = vsel %vm3943_vm8, %v321_v12, 0.0  ;;  %v338_v12 = vld [vmem:[%s2254_s30 + $0xf0] sm:$0xff]  ;;  %vm3953_vm8 = vcmp.lt.s32.totalorder %v2350_v56, 480  ;;  %v1424_v15 = vadd.f32 -0.5, %v2614_v62 }
  0xb6   : > { %3926 = vst [vmem:[#allocation40_spill] sm:$0xff] %v2604_v14  ;;  %v333_v14 = vld [vmem:[%s2254_s30 + $0xc8] sm:$0xff]  ;;  %v2658_v2 = vsel %vm3941_vm7, %v320_v29, 0.0  ;;  %vm3951_vm7 = vcmp.lt.s32.totalorder %v2341_v53, 480 }
  0xb7   : > { %3927 = vst [vmem:[#allocation41_spill] sm:$0xff] %v2608_v13  ;;  %v332_v13 = vld [vmem:[%s2254_s30 + $0xc0] sm:$0xff]  ;;  %v2680_v29 = vsel %vm3951_vm7, %v325_v16, 0.0  ;;  %vm3961_vm7 = vcmp.lt.s32.totalorder %v2369_v63, 480 }
  0xb8   : > { %3928 = vst [vmem:[#allocation42_spill] sm:$0xff] %v2614_v62  ;;  %v2702_v16 = vsel %vm3961_vm7, %v330_v6, 0.0  ;;  %vm3989_vm7 = vcmp.lt.s32.totalorder %v2302_v40, 480 }
  0xb9   : > { %3929 = vst [vmem:[#allocation43_spill] sm:$0xff] %v2618_v61 }
  0xba   : > { %3930 = vst [vmem:[#allocation44_spill] sm:$0xff] %v2622_v3  ;;  %v335_v3 = vld [vmem:[%s2254_s30 + $0xd8] sm:$0xff] }
  0xbb   : > { %3931 = vst [vmem:[#allocation45_spill] sm:$0xff] %v2626_v33  ;;  %v334_v33 = vld [vmem:[%s2254_s30 + $0xd0] sm:$0xff]  ;;  %v2722_v6 = vsel %vm562_vm14, %v335_v3, 0.0 }
  0xbc   : > { %3932 = vst [vmem:[#allocation46_spill] sm:$0xff] %v2632_v34  ;;  %v2654_v34 = vsel %vm3939_vm6, %v319_v60, 0.0  ;;  %vm3949_vm6 = vcmp.lt.s32.totalorder %v2338_v52, 480 }
  0xbd   : > { %3933 = vst [vmem:[#allocation47_spill] sm:$0xff] %v2636_v36  ;;  %v2676_v60 = vsel %vm3949_vm6, %v324_v25, 0.0  ;;  %vm3959_vm6 = vcmp.lt.s32.totalorder %v2359_v59, 480  ;;  %v4160_v24 = vld [vmem:[#allocation40_spill] sm:$0xff] }
  0xbe   : > { %3934 = vst [vmem:[#allocation48_spill] sm:$0xff] %v2640_v37  ;;  %v2668_v37 = vsel %vm3945_vm4, %v322_v30, 0.0  ;;  %vm3955_vm4 = vcmp.lt.s32.totalorder %v2353_v57, 480  ;;  %v2698_v25 = vsel %vm3959_vm6, %v329_v20, 0.0  ;;  %v2718_v20 = vsel %vm561_vm15, %v334_v33, 0.0 }
  0xbf   : > { %3936 = vst [vmem:[#allocation49_spill] sm:$0xff] %v2644_v38  ;;  %v337_v38 = vld [vmem:[%s2254_s30 + $0xe8] sm:$0xff]  ;;  %v2690_v30 = vsel %vm3955_vm4, %v327_v28, 0.0  ;;  %vm3966_vm4 = vcmp.lt.s32.totalorder %v2386_v7, 480  ;;  %vm3986_vm6 = vcmp.lt.s32.totalorder %v2299_v39, 480 }
  0xc0   : > { %3938 = vst [vmem:[#allocation50_spill] sm:$0xff] %v2650_v4  ;;  %v2714_v21 = vsel %vm3966_vm4, %v333_v14, 0.0  ;;  %v2734_v14 = vsel %vm565_vm12, %v338_v12, 0.0  ;;  %vm3996_vm4 = vcmp.lt.s32.totalorder %v2308_v42, 480 }
  0xc1   : > { %3940 = vst [vmem:[#allocation51_spill] sm:$0xff] %v2654_v34 }
  0xc2   : > { %3942 = vst [vmem:[#allocation52_spill] sm:$0xff] %v2658_v2  ;;  %v2686_v2 = vsel %vm3953_vm8, %v326_v9, 0.0  ;;  %v2706_v9 = vsel %vm558_vm10, %v331_v5, 0.0  ;;  %vm3964_vm8 = vcmp.lt.s32.totalorder %v2375_v1, 480  ;;  %v2726_v5 = vsel %vm563_vm9, %v336_v18, 0.0 }
  0xc3   : > { %3944 = vst [vmem:[#allocation53_spill] sm:$0xff] %v2662_v22  ;;  %v339_v22 = vld [vmem:[%s2254_s30 + $0xf8] sm:$0xff]  ;;  %v2710_v28 = vsel %vm3964_vm8, %v332_v13, 0.0  ;;  %v2730_v13 = vsel %vm564_vm11, %v337_v38, 0.0  ;;  %v3976_v18 = vunpack.c.h.bf16 %v2314_v44  ;;  %vm3992_vm8 = vcmp.lt.s32.totalorder %v2305_v41, 480 }
  0xc4   : > { %3946 = vst [vmem:[#allocation54_spill] sm:$0xff] %v2668_v37  ;;  %v2738_v33 = vsel %vm566_vm13, %v339_v22, 0.0  ;;  %v3980_v22 = vunpack.c.h.bf16 %v2329_v49 }
  0xc5   : > { %3948 = vst [vmem:[#allocation55_spill] sm:$0xff] %v2672_v11  ;;  %v2750_v38 = vsel %vm536_vm1, %v3976_v18, 0.0  ;;  %v3985_v18 = vunpack.c.h.bf16 %v2344_v54 }
  0xc6   : > { %3950 = vst [vmem:[#allocation56_spill] sm:$0xff] %v2676_v60 }
  0xc7   : > { %3952 = vst [vmem:[#allocation57_spill] sm:$0xff] %v2680_v29 }
  0xc8   : > { %3954 = vst [vmem:[#allocation58_spill] sm:$0xff] %v2686_v2 }
  0xc9   : > { %3956 = vst [vmem:[#allocation59_spill] sm:$0xff] %v2690_v30 }
  0xca   : > { %3958 = vst [vmem:[#allocation60_spill] sm:$0xff] %v2694_v17 }
  0xcb   : > { %3960 = vst [vmem:[#allocation61_spill] sm:$0xff] %v2698_v25 }
  0xcc   : > { %3962 = vst [vmem:[#allocation62_spill] sm:$0xff] %v2702_v16 }
  0xcd   : > { %3963 = vst [vmem:[#allocation63_spill] sm:$0xff] %v2706_v9 }
  0xce   : > { %3965 = vst [vmem:[#allocation64_spill] sm:$0xff] %v2710_v28 }
  0xcf   : > { %3967 = vst [vmem:[#allocation65_spill] sm:$0xff] %v2714_v21 }
  0xd0   : > { %3968 = vst [vmem:[#allocation66_spill] sm:$0xff] %v2718_v20  ;;  %v3974_v20 = vunpack.c.l.bf16 %v2314_v44 }
  0xd1   : > { %3969 = vst [vmem:[#allocation67_spill] sm:$0xff] %v2722_v6 }
  0xd2   : > { %3970 = vst [vmem:[#allocation68_spill] sm:$0xff] %v2726_v5  ;;  %v2744_v3 = vsel %vm535_vm0, %v3974_v20, 0.0  ;;  %v3982_v20 = vunpack.c.l.bf16 %v2344_v54 }
  0xd3   : > { %3971 = vst [vmem:[#allocation69_spill] sm:$0xff] %v2730_v13  ;;  %v3978_v13 = vunpack.c.l.bf16 %v2329_v49 }
  0xd4   : > { %3972 = vst [vmem:[#allocation70_spill] sm:$0xff] %v2734_v14  ;;  %v2768_v44 = vsel %vm3983_vm5, %v3982_v20, 0.0  ;;  %v3994_v20 = vld [vmem:[#allocation12_spill] sm:$0xff]  ;;  %vm3999_vm5 = vcmp.lt.s32.totalorder %v2311_v43, 480 }
  0xd5   : > { %3973 = vst [vmem:[#allocation71_spill] sm:$0xff] %v2738_v33  ;;  %v2756_v12 = vsel %vm537_vm2, %v3978_v13, 0.0  ;;  %v2762_v33 = vsel %vm538_vm3, %v3980_v22, 0.0  ;;  %v3988_v13 = vunpack.c.l.bf16 %v2347_v55  ;;  %v3991_v22 = vunpack.c.h.bf16 %v2347_v55 }
  0xd6   : > { %3975 = vst [vmem:[#allocation72_spill] sm:$0xff] %v2744_v3  ;;  %v4162_v3 = vld [vmem:[#allocation44_spill] sm:$0xff] }
  0xd7   : > { %3977 = vst [vmem:[#allocation73_spill] sm:$0xff] %v2750_v38  ;;  %v2774_v38 = vsel %vm3986_vm6, %v3985_v18, 0.0  ;;  %v2780_v49 = vsel %vm3989_vm7, %v3988_v13, 0.0  ;;  %v3998_v18 = vunpack.c.h.bf16 %v3994_v20  ;;  %v4001_v13 = vld [vmem:[#allocation13_spill] sm:$0xff]  ;;  %vm4003_vm6 = vcmp.lt.s32.totalorder %v2317_v45, 480 }
  0xd8   : > { %3979 = vst [vmem:[#allocation74_spill] sm:$0xff] %v2756_v12  ;;  %vm4006_vm7 = vcmp.lt.s32.totalorder %v2320_v46, 480  ;;  %v4161_v12 = vld [vmem:[#allocation41_spill] sm:$0xff] }
  0xd9   : > { %3981 = vst [vmem:[#allocation75_spill] sm:$0xff] %v2762_v33  ;;  %v2786_v33 = vsel %vm3992_vm8, %v3991_v22, 0.0  ;;  %v4005_v22 = vunpack.c.h.bf16 %v4001_v13  ;;  %vm4010_vm8 = vcmp.lt.s32.totalorder %v2323_v47, 480 }
  0xda   : > { %3984 = vst [vmem:[#allocation76_spill] sm:$0xff] %v2768_v44  ;;  %v3995_v44 = vunpack.c.l.bf16 %v3994_v20 }
  0xdb   : > { %3987 = vst [vmem:[#allocation77_spill] sm:$0xff] %v2774_v38  ;;  %v2798_v38 = vsel %vm3999_vm5, %v3998_v18, 0.0  ;;  %vm4017_vm5 = vcmp.lt.s32.totalorder %v2332_v50, 480 }
  0xdc   : > { %3990 = vst [vmem:[#allocation78_spill] sm:$0xff] %v2780_v49  ;;  %v2792_v54 = vsel %vm3996_vm4, %v3995_v44, 0.0  ;;  %v4002_v49 = vunpack.c.l.bf16 %v4001_v13  ;;  %v4008_v44 = vld [vmem:[#allocation14_spill] sm:$0xff]  ;;  %vm4013_vm4 = vcmp.lt.s32.totalorder %v2326_v48, 480 }
  0xdd   : > { %3993 = vst [vmem:[#allocation79_spill] sm:$0xff] %v2786_v33  ;;  %v2810_v33 = vsel %vm4006_vm7, %v4005_v22, 0.0  ;;  %v4012_v18 = vunpack.c.h.bf16 %v4008_v44  ;;  %vm4024_vm7 = vcmp.lt.s32.totalorder %v2338_v52, 480 }
  0xde   : > { %3997 = vst [vmem:[#allocation12_spill] sm:$0xff] %v2792_v54  ;;  %v2804_v55 = vsel %vm4003_vm6, %v4002_v49, 0.0  ;;  %v4009_v54 = vunpack.c.l.bf16 %v4008_v44  ;;  %v4015_v49 = vld [vmem:[#allocation15_spill] sm:$0xff]  ;;  %vm4020_vm6 = vcmp.lt.s32.totalorder %v2335_v51, 480 }
  0xdf   : > { %4000 = vst [vmem:[#allocation80_spill] sm:$0xff] %v2798_v38  ;;  %v2822_v38 = vsel %vm4013_vm4, %v4012_v18, 0.0  ;;  %v4019_v22 = vunpack.c.h.bf16 %v4015_v49  ;;  %vm4031_vm4 = vcmp.lt.s32.totalorder %v2350_v56, 480 }
  0xe0   : > { %4004 = vst [vmem:[#allocation13_spill] sm:$0xff] %v2804_v55  ;;  %v2816_v20 = vsel %vm4010_vm8, %v4009_v54, 0.0  ;;  %v4016_v55 = vunpack.c.l.bf16 %v4015_v49  ;;  %v4022_v54 = vld [vmem:[#allocation16_spill] sm:$0xff]  ;;  %vm4027_vm8 = vcmp.lt.s32.totalorder %v2341_v53, 480 }
  0xe1   : > { %4007 = vst [vmem:[#allocation81_spill] sm:$0xff] %v2810_v33  ;;  %v2834_v33 = vsel %vm4020_vm6, %v4019_v22, 0.0  ;;  %v4026_v18 = vunpack.c.h.bf16 %v4022_v54  ;;  %vm4038_vm6 = vcmp.lt.s32.totalorder %v2356_v58, 480 }
  0xe2   : > { %4011 = vst [vmem:[#allocation14_spill] sm:$0xff] %v2816_v20  ;;  %v2828_v13 = vsel %vm4017_vm5, %v4016_v55, 0.0  ;;  %v4023_v20 = vunpack.c.l.bf16 %v4022_v54  ;;  %v4029_v55 = vld [vmem:[#allocation17_spill] sm:$0xff]  ;;  %vm4034_vm5 = vcmp.lt.s32.totalorder %v2353_v57, 480 }
  0xe3   : > { %4014 = vst [vmem:[#allocation82_spill] sm:$0xff] %v2822_v38  ;;  %v2846_v38 = vsel %vm4027_vm8, %v4026_v18, 0.0  ;;  %v4033_v22 = vunpack.c.h.bf16 %v4029_v55  ;;  %vm4045_vm8 = vcmp.lt.s32.totalorder %v2369_v63, 480 }
  0xe4   : > { %4018 = vst [vmem:[#allocation15_spill] sm:$0xff] %v2828_v13  ;;  %v2840_v44 = vsel %vm4024_vm7, %v4023_v20, 0.0  ;;  %v4030_v13 = vunpack.c.l.bf16 %v4029_v55  ;;  %v4036_v20 = vld [vmem:[#allocation18_spill] sm:$0xff]  ;;  %vm4041_vm7 = vcmp.lt.s32.totalorder %v2359_v59, 480 }
  0xe5   : > { %4021 = vst [vmem:[#allocation83_spill] sm:$0xff] %v2834_v33  ;;  %v2858_v33 = vsel %vm4034_vm5, %v4033_v22, 0.0  ;;  %v4040_v18 = vunpack.c.h.bf16 %v4036_v20  ;;  %vm4054_vm5 = vcmp.lt.s32.totalorder %v2386_v7, 480 }
  0xe6   : > { %4025 = vst [vmem:[#allocation16_spill] sm:$0xff] %v2840_v44  ;;  %v2852_v49 = vsel %vm4031_vm4, %v4030_v13, 0.0  ;;  %v4037_v44 = vunpack.c.l.bf16 %v4036_v20  ;;  %v4043_v13 = vld [vmem:[#allocation19_spill] sm:$0xff]  ;;  %vm4051_vm4 = vcmp.lt.s32.totalorder %v2375_v1, 480 }
  0xe7   : > { %4028 = vst [vmem:[#allocation84_spill] sm:$0xff] %v2846_v38  ;;  %v2870_v38 = vsel %vm4041_vm7, %v4040_v18, 0.0  ;;  %v4047_v22 = vunpack.c.h.bf16 %v4043_v13  ;;  %vm4091_vm7 = vcmp.lt.s32.totalorder %v2311_v43, 480 }
  0xe8   : > { %4032 = vst [vmem:[#allocation17_spill] sm:$0xff] %v2852_v49  ;;  %v2864_v54 = vsel %vm4038_vm6, %v4037_v44, 0.0  ;;  %v4044_v49 = vunpack.c.l.bf16 %v4043_v13  ;;  %v4049_v44 = vld [vmem:[#allocation20_spill] sm:$0xff]  ;;  %vm4089_vm6 = vcmp.lt.s32.totalorder %v2308_v42, 480  ;;  %v4097_v42 = vld [vmem:[#allocation30_spill] sm:$0xff] }
  0xe9   : > { %4035 = vst [vmem:[#allocation85_spill] sm:$0xff] %v2858_v33  ;;  %v2882_v33 = vsel %vm558_vm10, %v4047_v22, 0.0  ;;  %v4053_v18 = vunpack.c.h.bf16 %v4049_v44  ;;  %v4101_v43 = vunpack.c.h.bf16 %v4097_v42 }
  0xea   : > { %4039 = vst [vmem:[#allocation18_spill] sm:$0xff] %v2864_v54  ;;  %v2876_v55 = vsel %vm4045_vm8, %v4044_v49, 0.0  ;;  %v4050_v54 = vunpack.c.l.bf16 %v4049_v44  ;;  %v4056_v49 = vld [vmem:[#allocation21_spill] sm:$0xff]  ;;  %vm4094_vm8 = vcmp.lt.s32.totalorder %v2317_v45, 480  ;;  %v4104_v45 = vld [vmem:[#allocation31_spill] sm:$0xff] }
  0xeb   : > { %4042 = vst [vmem:[#allocation86_spill] sm:$0xff] %v2870_v38  ;;  %v2894_v38 = vsel %vm4054_vm5, %v4053_v18, 0.0  ;;  %v4059_v22 = vunpack.c.h.bf16 %v4056_v49  ;;  %vm4099_vm5 = vcmp.lt.s32.totalorder %v2323_v47, 480  ;;  %v4111_v47 = vld [vmem:[#allocation32_spill] sm:$0xff] }
  0xec   : > { %4046 = vst [vmem:[#allocation19_spill] sm:$0xff] %v2876_v55  ;;  %v2888_v20 = vsel %vm4051_vm4, %v4050_v54, 0.0  ;;  %v4057_v55 = vunpack.c.l.bf16 %v4056_v49  ;;  %v4061_v54 = vld [vmem:[#allocation22_spill] sm:$0xff]  ;;  %vm4096_vm4 = vcmp.lt.s32.totalorder %v2320_v46, 480  ;;  %v4108_v46 = vunpack.c.h.bf16 %v4104_v45 }
  0xed   : > { %4048 = vst [vmem:[#allocation87_spill] sm:$0xff] %v2882_v33  ;;  %v2906_v33 = vsel %vm562_vm14, %v4059_v22, 0.0  ;;  %v4064_v18 = vunpack.c.h.bf16 %v4061_v54 }
  0xee   : > { %4052 = vst [vmem:[#allocation20_spill] sm:$0xff] %v2888_v20  ;;  %v2900_v13 = vsel %vm561_vm15, %v4057_v55, 0.0  ;;  %v4062_v20 = vunpack.c.l.bf16 %v4061_v54  ;;  %v4066_v55 = vld [vmem:[#allocation23_spill] sm:$0xff] }
  0xef   : > { %4055 = vst [vmem:[#allocation88_spill] sm:$0xff] %v2894_v38  ;;  %v2918_v38 = vsel %vm564_vm11, %v4064_v18, 0.0  ;;  %v4069_v22 = vunpack.c.h.bf16 %v4066_v55 }
  0xf0   : > { %4058 = vst [vmem:[#allocation21_spill] sm:$0xff] %v2900_v13  ;;  %v2912_v44 = vsel %vm563_vm9, %v4062_v20, 0.0  ;;  %v4067_v13 = vunpack.c.l.bf16 %v4066_v55  ;;  %v4071_v20 = vld [vmem:[#allocation24_spill] sm:$0xff] }
  0xf1   : > { %4060 = vst [vmem:[#allocation89_spill] sm:$0xff] %v2906_v33  ;;  %v2930_v33 = vsel %vm566_vm13, %v4069_v22, 0.0  ;;  %v4073_v18 = vunpack.c.h.bf16 %v4071_v20 }
  0xf2   : > { %4063 = vst [vmem:[#allocation22_spill] sm:$0xff] %v2912_v44  ;;  %v2924_v49 = vsel %vm565_vm12, %v4067_v13, 0.0  ;;  %v4072_v44 = vunpack.c.l.bf16 %v4071_v20  ;;  %v4074_v13 = vld [vmem:[#allocation25_spill] sm:$0xff] }
  0xf3   : > { %4065 = vst [vmem:[#allocation90_spill] sm:$0xff] %v2918_v38  ;;  %v2942_v38 = vsel %vm536_vm1, %v4073_v18, 0.0  ;;  %v4076_v22 = vunpack.c.h.bf16 %v4074_v13  ;;  %vm4081_vm1 = vcmp.lt.s32.totalorder %v2299_v39, 480 }
  0xf4   : > { %4068 = vst [vmem:[#allocation23_spill] sm:$0xff] %v2924_v49  ;;  %v2936_v54 = vsel %vm535_vm0, %v4072_v44, 0.0  ;;  %v4075_v49 = vunpack.c.l.bf16 %v4074_v13  ;;  %v4078_v44 = vunpack.c.l.bf16 %v4077_v19  ;;  %vm4079_vm0 = vcmp.lt.s32.totalorder %v2290_v35, 480  ;;  %v4087_v35 = vld [vmem:[#allocation28_spill] sm:$0xff] }
  0xf5   : > { %4070 = vst [vmem:[#allocation91_spill] sm:$0xff] %v2930_v33  ;;  %v2954_v33 = vsel %vm538_vm3, %v4076_v22, 0.0  ;;  %v2966_v18 = vsel %vm4081_vm1, %v4080_v23, 0.0  ;;  %vm4086_vm3 = vcmp.lt.s32.totalorder %v2305_v41, 480  ;;  %v4090_v39 = vunpack.c.h.bf16 %v4087_v35 }
  0xf6   : > { %v2948_v55 = vsel %vm537_vm2, %v4075_v49, 0.0  ;;  %v2960_v20 = vsel %vm4079_vm0, %v4078_v44, 0.0  ;;  %v4083_v49 = vunpack.c.l.bf16 %v4082_v27  ;;  %vm4084_vm2 = vcmp.lt.s32.totalorder %v2302_v40, 480  ;;  %v4092_v40 = vld [vmem:[#allocation29_spill] sm:$0xff] }
  0xf7   : > { %v2978_v22 = vsel %vm4086_vm3, %v4085_v31, 0.0  ;;  %v4088_v44 = vunpack.c.l.bf16 %v4087_v35  ;;  %v2990_v23 = vsel %vm4091_vm7, %v4090_v39, 0.0  ;;  %v4095_v41 = vunpack.c.h.bf16 %v4092_v40 }
  0xf8   : > { %v2972_v13 = vsel %vm4084_vm2, %v4083_v49, 0.0  ;;  %v4093_v49 = vunpack.c.l.bf16 %v4092_v40  ;;  %vm4102_vm0 = vcmp.lt.s32.totalorder %v2326_v48, 480  ;;  %vm4106_vm1 = vcmp.lt.s32.totalorder %v2332_v50, 480  ;;  %v4118_v50 = vld [vmem:[#allocation33_spill] sm:$0xff] }
  0xf9   : > { %v2984_v19 = vsel %vm4089_vm6, %v4088_v44, 0.0  ;;  %v3002_v31 = vsel %vm4096_vm4, %v4095_v41, 0.0  ;;  %v4098_v44 = vunpack.c.l.bf16 %v4097_v42  ;;  %v3014_v39 = vsel %vm4102_vm0, %v4101_v43, 0.0 }
  0xfa   : > { %v2996_v27 = vsel %vm4094_vm8, %v4093_v49, 0.0  ;;  %4103 = vst [vmem:[#allocation25_spill] sm:$0xff] %v3014_v39  ;;  %v4105_v49 = vunpack.c.l.bf16 %v4104_v45  ;;  %vm4109_vm2 = vcmp.lt.s32.totalorder %v2335_v51, 480  ;;  %vm4113_vm3 = vcmp.lt.s32.totalorder %v2338_v52, 480  ;;  %v4125_v52 = vld [vmem:[#allocation34_spill] sm:$0xff] }
  0xfb   : > { %v3008_v35 = vsel %vm4099_vm5, %v4098_v44, 0.0  ;;  %v3026_v41 = vsel %vm4109_vm2, %v4108_v46, 0.0  ;;  %v4112_v44 = vunpack.c.l.bf16 %v4111_v47  ;;  %v4115_v48 = vunpack.c.h.bf16 %v4111_v47 }
  0xfc   : > { %4100 = vst [vmem:[#allocation24_spill] sm:$0xff] %v3008_v35  ;;  %v3020_v40 = vsel %vm4106_vm1, %v4105_v49, 0.0  ;;  %vm4116_vm6 = vcmp.lt.s32.totalorder %v2341_v53, 480  ;;  %v4119_v49 = vunpack.c.l.bf16 %v4118_v50  ;;  %vm4120_vm7 = vcmp.lt.s32.totalorder %v2350_v56, 480  ;;  %v4132_v56 = vld [vmem:[#allocation35_spill] sm:$0xff] }
  0xfd   : > { %4107 = vst [vmem:[#allocation26_spill] sm:$0xff] %v3020_v40  ;;  %v3032_v42 = vsel %vm4113_vm3, %v4112_v44, 0.0  ;;  %v3038_v43 = vsel %vm4116_vm6, %v4115_v48, 0.0  ;;  %v4122_v51 = vunpack.c.h.bf16 %v4118_v50  ;;  %vm4123_vm8 = vcmp.lt.s32.totalorder %v2353_v57, 480 }
  0xfe   : > { %4110 = vst [vmem:[#allocation27_spill] sm:$0xff] %v3026_v41  ;;  %v3044_v45 = vsel %vm4120_vm7, %v4119_v49, 0.0  ;;  %v4126_v44 = vunpack.c.l.bf16 %v4125_v52  ;;  %vm4127_vm4 = vcmp.lt.s32.totalorder %v2356_v58, 480  ;;  %v4129_v53 = vunpack.c.h.bf16 %v4125_v52  ;;  %v4138_v58 = vld [vmem:[#allocation36_spill] sm:$0xff] }
  0xff   : > { %4114 = vst [vmem:[#allocation28_spill] sm:$0xff] %v3032_v42  ;;  %v3050_v46 = vsel %vm4123_vm8, %v4122_v51, 0.0  ;;  %vm4130_vm5 = vcmp.lt.s32.totalorder %v2359_v59, 480  ;;  %v4133_v49 = vunpack.c.l.bf16 %v4132_v56  ;;  %vm4134_vm0 = vcmp.lt.s32.totalorder %v2369_v63, 480  ;;  %v4145_v63 = vld [vmem:[#allocation37_spill] sm:$0xff] }
 0x100   : > { %4117 = vst [vmem:[#allocation29_spill] sm:$0xff] %v3038_v43  ;;  %v3056_v47 = vsel %vm4127_vm4, %v4126_v44, 0.0  ;;  %v3062_v48 = vsel %vm4130_vm5, %v4129_v53, 0.0  ;;  %v4136_v57 = vunpack.c.h.bf16 %v4132_v56  ;;  %v4139_v44 = vunpack.c.l.bf16 %v4138_v58 }
 0x101   : > { %4121 = vst [vmem:[#allocation30_spill] sm:$0xff] %v3044_v45  ;;  %v3068_v50 = vsel %vm4134_vm0, %v4133_v49, 0.0  ;;  %vm4140_vm1 = vcmp.lt.s32.totalorder %v2375_v1, 480  ;;  %v4142_v59 = vunpack.c.h.bf16 %v4138_v58  ;;  %vm4143_vm2 = vcmp.lt.s32.totalorder %v2386_v7, 480  ;;  %v4150_v1 = vld [vmem:[#allocation38_spill] sm:$0xff] }
 0x102   : > { %4124 = vst [vmem:[#allocation31_spill] sm:$0xff] %v3050_v46  ;;  %v3074_v51 = vsel %vm558_vm10, %v4136_v57, 0.0  ;;  %v3080_v52 = vsel %vm4140_vm1, %v4139_v44, 0.0  ;;  %v4146_v49 = vunpack.c.l.bf16 %v4145_v63  ;;  %v4148_v0 = vunpack.c.h.bf16 %v4145_v63 }
 0x103   : > { %4128 = vst [vmem:[#allocation32_spill] sm:$0xff] %v3056_v47  ;;  %v3086_v53 = vsel %vm4143_vm2, %v4142_v59, 0.0  ;;  %v4151_v44 = vunpack.c.l.bf16 %v4150_v1  ;;  %v4153_v7 = vunpack.c.h.bf16 %v4150_v1  ;;  %v1423_v1 = vadd.f32 -0.5, %v4161_v12 }
 0x104   : > { %4131 = vst [vmem:[#allocation33_spill] sm:$0xff] %v3062_v48  ;;  %v3092_v56 = vsel %vm561_vm15, %v4146_v49, 0.0  ;;  %v3098_v57 = vsel %vm562_vm14, %v4148_v0, 0.0  ;;  %v4156_v49 = vunpack.c.l.bf16 %v4155_v8  ;;  %v3122_v0 = vsel %vm566_vm13, %v4158_v10, 0.0  ;;  %v4166_v10 = vld [vmem:[#allocation49_spill] sm:$0xff] }
 0x105   : > { %4135 = vst [vmem:[#allocation34_spill] sm:$0xff] %v3068_v50  ;;  %v3104_v58 = vsel %vm563_vm9, %v4151_v44, 0.0  ;;  %v3110_v59 = vsel %vm564_vm11, %v4153_v7, 0.0  ;;  %v1422_v44 = vadd.f32 -0.5, %v4160_v24  ;;  %v1425_v7 = vadd.f32 -0.5, %v2618_v61  ;;  %v4171_v50 = vld [vmem:[#allocation71_spill] sm:$0xff] }
 0x106   : > { %4137 = vst [vmem:[#allocation35_spill] sm:$0xff] %v3074_v51  ;;  %v3116_v63 = vsel %vm565_vm12, %v4156_v49, 0.0  ;;  %v4164_v49 = vld [vmem:[#allocation46_spill] sm:$0xff]  ;;  %v1429_v8 = vadd.f32 -0.5, %v2636_v36  ;;  %v1432_v24 = vadd.f32 -0.5, %v2650_v4  ;;  %v1433_v12 = vadd.f32 -0.5, %v2654_v34 }
 0x107   : > { %4141 = vst [vmem:[#allocation36_spill] sm:$0xff] %v3080_v52  ;;  %v1439_v36 = vadd.f32 -0.5, %v2680_v29  ;;  %v1442_v4 = vadd.f32 -0.5, %v2694_v17  ;;  %v1443_v34 = vadd.f32 -0.5, %v2698_v25  ;;  %v4169_v52 = vld [vmem:[#allocation66_spill] sm:$0xff]  ;;  %v1449_v29 = vadd.f32 -0.5, %v2722_v6 }
 0x108   : > { %4144 = vst [vmem:[#allocation92_spill] sm:$0xff] %v3086_v53  ;;  %v4168_v53 = vld [vmem:[#allocation53_spill] sm:$0xff]  ;;  %v1452_v17 = vadd.f32 -0.5, %v2734_v14  ;;  %v1453_v25 = vadd.f32 -0.5, %v4171_v50  ;;  %v695_v48 = vmul.f32 10.0, %v1422_v44  ;;  %v697_v47 = vmul.f32 10.0, %v1424_v15 }
 0x109   : > { %4147 = vst [vmem:[#allocation37_spill] sm:$0xff] %v3092_v56  ;;  %v4167_v56 = vld [vmem:[#allocation52_spill] sm:$0xff]  ;;  %v1435_v61 = vadd.f32 -0.5, %v4168_v53  ;;  %v1445_v53 = vadd.f32 -0.5, %v2706_v9  ;;  %v4170_v51 = vld [vmem:[#allocation69_spill] sm:$0xff]  ;;  %v698_v9 = vmul.f32 10.0, %v1425_v7 }
 0x10a   : > { %4149 = vst [vmem:[#allocation93_spill] sm:$0xff] %v3098_v57  ;;  %v4165_v57 = vld [vmem:[#allocation48_spill] sm:$0xff]  ;;  %v1434_v62 = vadd.f32 -0.5, %v4167_v56  ;;  %v1444_v56 = vadd.f32 -0.5, %v2702_v16  ;;  %v696_v16 = vmul.f32 10.0, %v1423_v1  ;;  %v705_v42 = vmul.f32 10.0, %v1432_v24 }
 0x10b   : > { %4152 = vst [vmem:[#allocation38_spill] sm:$0xff] %v3104_v58  ;;  %v4163_v58 = vld [vmem:[#allocation45_spill] sm:$0xff]  ;;  %v1430_v26 = vadd.f32 -0.5, %v4165_v57  ;;  %v1440_v57 = vadd.f32 -0.5, %v2686_v2  ;;  %v1450_v2 = vadd.f32 -0.5, %v2726_v5  ;;  %v706_v6 = vmul.f32 10.0, %v1433_v12 }
 0x10c   : > { %4154 = vst [vmem:[#allocation94_spill] sm:$0xff] %v3110_v59  ;;  %v1426_v59 = vadd.f32 -0.5, %v4162_v3  ;;  %v1427_v32 = vadd.f32 -0.5, %v4163_v58  ;;  %v1436_v3 = vadd.f32 -0.5, %v2668_v37  ;;  %v1437_v58 = vadd.f32 -0.5, %v2672_v11 }
 0x10d   : > { %4157 = vst [vmem:[#allocation39_spill] sm:$0xff] %v3116_v63  ;;  %v1428_v63 = vadd.f32 -0.5, %v4164_v49  ;;  %v1438_v49 = vadd.f32 -0.5, %v2676_v60  ;;  %v1446_v37 = vadd.f32 -0.5, %v2710_v28  ;;  %v1447_v11 = vadd.f32 -0.5, %v2714_v21 }
 0x10e   : > { %4159 = vst [vmem:[#allocation95_spill] sm:$0xff] %v3122_v0  ;;  %v1431_v0 = vadd.f32 -0.5, %v4166_v10  ;;  %v1441_v10 = vadd.f32 -0.5, %v2690_v30  ;;  %v1448_v60 = vadd.f32 -0.5, %v4169_v52  ;;  %v1451_v30 = vadd.f32 -0.5, %v4170_v51 }
 0x10f   : > { %v699_v46 = vmul.f32 10.0, %v1426_v59  ;;  %v700_v28 = vmul.f32 10.0, %v1427_v32  ;;  %v701_v45 = vmul.f32 10.0, %v1428_v63  ;;  %v702_v21 = vmul.f32 10.0, %v1429_v8 }
 0x110   : > { %v703_v43 = vmul.f32 10.0, %v1430_v26  ;;  %v704_v52 = vmul.f32 10.0, %v1431_v0  ;;  %v707_v41 = vmul.f32 10.0, %v1434_v62  ;;  %v708_v5 = vmul.f32 10.0, %v1435_v61 }
 0x111   : > { %v709_v40 = vmul.f32 10.0, %v1436_v3  ;;  %v710_v51 = vmul.f32 10.0, %v1437_v58  ;;  %v711_v39 = vmul.f32 10.0, %v1438_v49  ;;  %v712_v14 = vmul.f32 10.0, %v1439_v36 }
 0x112   : > { %v713_v35 = vmul.f32 10.0, %v1440_v57  ;;  %v714_v50 = vmul.f32 10.0, %v1441_v10  ;;  %v715_v44 = vmul.f32 10.0, %v1442_v4  ;;  %v716_v1 = vmul.f32 10.0, %v1443_v34 }
 0x113   : > { %v717_v15 = vmul.f32 10.0, %v1444_v56  ;;  %v718_v7 = vmul.f32 10.0, %v1445_v53  ;;  %v719_v59 = vmul.f32 10.0, %v1446_v37  ;;  %v720_v32 = vmul.f32 10.0, %v1447_v11 }
 0x114   : > { %v721_v63 = vmul.f32 10.0, %v1448_v60  ;;  %v722_v8 = vmul.f32 10.0, %v1449_v29  ;;  %v723_v26 = vmul.f32 10.0, %v1450_v2  ;;  %v724_v0 = vmul.f32 10.0, %v1451_v30 }
 0x115   : > { %v725_v24 = vmul.f32 10.0, %v1452_v17  ;;  %v726_v12 = vmul.f32 10.0, %v1453_v25  ;;  %v727_v62 = vmul.f32 0.5, %v695_v48  ;;  %v728_v61 = vmul.f32 0.5, %v696_v16 }
 0x116   : > { %v729_v3 = vmul.f32 0.5, %v697_v47  ;;  %v730_v58 = vmul.f32 0.5, %v698_v9  ;;  %v731_v49 = vmul.f32 0.5, %v699_v46  ;;  %v732_v36 = vmul.f32 0.5, %v700_v28 }
 0x117   : > { %v733_v57 = vmul.f32 0.5, %v701_v45  ;;  %v734_v10 = vmul.f32 0.5, %v702_v21  ;;  %v735_v4 = vmul.f32 0.5, %v703_v43  ;;  %v736_v34 = vmul.f32 0.5, %v704_v52 }
 0x118   : > { %v737_v56 = vmul.f32 0.5, %v705_v42  ;;  %v738_v53 = vmul.f32 0.5, %v706_v6  ;;  %v739_v37 = vmul.f32 0.5, %v707_v41  ;;  %v740_v11 = vmul.f32 0.5, %v708_v5 }
 0x119   : > { %v3156_v60 = vmul.f32 0.5, %v709_v40  ;;  %v3158_v2 = vmul.f32 0.5, %v710_v51  ;;  %v3160_v29 = vmul.f32 0.5, %v711_v39  ;;  %1699 = vtanh.f32 %v727_v62 }
 0x11a   : > { %v3162_v30 = vmul.f32 0.5, %v712_v14  ;;  %v3164_v17 = vmul.f32 0.5, %v713_v35  ;;  %v3166_v25 = vmul.f32 0.5, %v714_v50  ;;  %1701 = vtanh.f32 %v728_v61  ;;  %v4178_v61 = vld [vmem:[#allocation30_spill] sm:$0xff] }
 0x11b   : > { %v3168_v16 = vmul.f32 0.5, %v715_v44  ;;  %v3170_v9 = vmul.f32 0.5, %v716_v1  ;;  %v3172_v28 = vmul.f32 0.5, %v717_v15  ;;  %1703 = vtanh.f32 %v729_v3 }
 0x11c   : > { %v3174_v21 = vmul.f32 0.5, %v718_v7  ;;  %v3176_v6 = vmul.f32 0.5, %v719_v59  ;;  %v3178_v5 = vmul.f32 0.5, %v720_v32  ;;  %1705 = vtanh.f32 %v730_v58 }
 0x11d   : > { %v3180_v14 = vmul.f32 0.5, %v721_v63  ;;  %v3182_v35 = vmul.f32 0.5, %v722_v8  ;;  %v3184_v39 = vmul.f32 0.5, %v723_v26  ;;  %1707 = vtanh.f32 %v731_v49  ;;  %v4175_v8 = vld [vmem:[#allocation27_spill] sm:$0xff]  ;;  %v4176_v26 = vld [vmem:[#allocation28_spill] sm:$0xff] }
 0x11e   : > { %v3186_v40 = vmul.f32 0.5, %v724_v0  ;;  %v3188_v41 = vmul.f32 0.5, %v725_v24  ;;  %v3190_v42 = vmul.f32 0.5, %v726_v12  ;;  %1709 = vtanh.f32 %v732_v36  ;;  %v4177_v12 = vld [vmem:[#allocation29_spill] sm:$0xff] }
 0x11f   : > { %v1700_v43 = vpop.eup %1699  ;;  %1711 = vtanh.f32 %v733_v57  ;;  %v3193_v45 = vadd.f32 -0.5, %v2936_v54  ;;  %v3196_v46 = vadd.f32 -0.5, %v2942_v38  ;;  %v3199_v47 = vadd.f32 -0.5, %v2948_v55  ;;  %v4179_v57 = vld [vmem:[#allocation31_spill] sm:$0xff] }
 0x120   : > { %v1702_v48 = vpop.eup %1701  ;;  %1713 = vtanh.f32 %v734_v10  ;;  %v3202_v50 = vadd.f32 -0.5, %v2954_v33  ;;  %v3205_v51 = vadd.f32 -0.5, %v2960_v20  ;;  %v3208_v52 = vadd.f32 -0.5, %v2966_v18 }
 0x121   : > { %v1704_v44 = vpop.eup %1703  ;;  %1715 = vtanh.f32 %v735_v4  ;;  %v3211_v54 = vadd.f32 -0.5, %v2972_v13  ;;  %v3214_v38 = vadd.f32 -0.5, %v2978_v22  ;;  %v3217_v55 = vadd.f32 -0.5, %v2984_v19  ;;  %v4172_v13 = vld [vmem:[#allocation24_spill] sm:$0xff]  ;;  %v4173_v22 = vld [vmem:[#allocation25_spill] sm:$0xff]  ;;  %v4174_v19 = vld [vmem:[#allocation26_spill] sm:$0xff] }
 0x122   : > { %v1706_v1 = vpop.eup %1705  ;;  %1717 = vtanh.f32 %v736_v34  ;;  %v3220_v33 = vadd.f32 -0.5, %v2990_v23  ;;  %v3223_v20 = vadd.f32 -0.5, %v2996_v27  ;;  %v3226_v18 = vadd.f32 -0.5, %v3002_v31 }
 0x123   : > { %v1708_v15 = vpop.eup %1707  ;;  %1719 = vtanh.f32 %v737_v56  ;;  %v3229_v7 = vadd.f32 -0.5, %v4172_v13  ;;  %v3232_v59 = vadd.f32 -0.5, %v4173_v22  ;;  %v3235_v32 = vadd.f32 -0.5, %v4174_v19  ;;  %v4180_v56 = vld [vmem:[#allocation32_spill] sm:$0xff]  ;;  %v4183_v19 = vld [vmem:[#allocation35_spill] sm:$0xff] }
 0x124   : > { %v1710_v63 = vpop.eup %1709  ;;  %1721 = vtanh.f32 %v738_v53  ;;  %v791_v23 = vmul.f32 0.5, %v1700_v43  ;;  %v3238_v27 = vadd.f32 -0.5, %v4175_v8  ;;  %v3241_v31 = vadd.f32 -0.5, %v4176_v26 }
 0x125   : > { %v1712_v0 = vpop.eup %1711  ;;  %1723 = vtanh.f32 %v739_v37  ;;  %v792_v24 = vmul.f32 0.5, %v1702_v48  ;;  %v3244_v62 = vadd.f32 -0.5, %v4177_v12  ;;  %v3247_v3 = vadd.f32 -0.5, %v4178_v61  ;;  %v4181_v37 = vld [vmem:[#allocation33_spill] sm:$0xff] }
 0x126   : > { %v1714_v58 = vpop.eup %1713  ;;  %1725 = vtanh.f32 %v740_v11  ;;  %v793_v49 = vmul.f32 0.5, %v1704_v44  ;;  %v794_v36 = vmul.f32 0.5, %v1706_v1  ;;  %v3250_v10 = vadd.f32 -0.5, %v4179_v57  ;;  %v4182_v44 = vld [vmem:[#allocation34_spill] sm:$0xff] }
 0x127   : > { %v1716_v4 = vpop.eup %1715  ;;  %1727 = vtanh.f32 %v3156_v60  ;;  %v795_v34 = vmul.f32 0.5, %v1708_v15  ;;  %v3254_v53 = vadd.f32 -0.5, %v4180_v56  ;;  %v3257_v43 = vadd.f32 -0.5, %v4181_v37 }
 0x128   : > { %v1718_v48 = vpop.eup %1717  ;;  %1729 = vtanh.f32 %v3158_v2  ;;  %v796_v13 = vmul.f32 0.5, %v1710_v63  ;;  %v3260_v11 = vadd.f32 0.5, %v791_v23  ;;  %v3263_v1 = vadd.f32 -0.5, %v4182_v44  ;;  %v4184_v63 = vld [vmem:[#allocation36_spill] sm:$0xff] }
 0x129   : > { %v1720_v22 = vpop.eup %1719  ;;  %1731 = vtanh.f32 %v3160_v29  ;;  %v797_v60 = vmul.f32 0.5, %v1712_v0  ;;  %v3266_v15 = vadd.f32 0.5, %v792_v24  ;;  %v3269_v8 = vadd.f32 -0.5, %v4183_v19  ;;  %v4186_v24 = vld [vmem:[#allocation92_spill] sm:$0xff] }
 0x12a   : > { %v1722_v26 = vpop.eup %1721  ;;  %1733 = vtanh.f32 %v3162_v30  ;;  %v3272_v12 = vadd.f32 0.5, %v793_v49  ;;  %v3274_v2 = vadd.f32 0.5, %v794_v36  ;;  %v3277_v23 = vadd.f32 -0.5, %v4184_v63  ;;  %v4188_v36 = vld [vmem:[#allocation37_spill] sm:$0xff] }
 0x12b   : > { %v1724_v61 = vpop.eup %1723  ;;  %1735 = vtanh.f32 %v3164_v17  ;;  %v798_v29 = vmul.f32 0.5, %v1714_v58  ;;  %v3280_v0 = vadd.f32 0.5, %v795_v34  ;;  %v3283_v57 = vadd.f32 -0.5, %v4186_v24  ;;  %v4190_v58 = vld [vmem:[#allocation93_spill] sm:$0xff] }
 0x12c   : > { %v1726_v56 = vpop.eup %1725  ;;  %1737 = vtanh.f32 %v3166_v25  ;;  %v799_v30 = vmul.f32 0.5, %v1716_v4  ;;  %v3286_v49 = vadd.f32 0.5, %v796_v13  ;;  %v3289_v37 = vadd.f32 -0.5, %v4188_v36  ;;  %v4191_v4 = vld [vmem:[#allocation38_spill] sm:$0xff] }
 0x12d   : > { %4185 = vst [vmem:[#allocation24_spill] sm:$0xff] %v3280_v0  ;;  %v1728_v44 = vpop.eup %1727  ;;  %1739 = vtanh.f32 %v3168_v16  ;;  %v800_v19 = vmul.f32 0.5, %v1718_v48  ;;  %v3292_v17 = vadd.f32 0.5, %v797_v60  ;;  %v3295_v34 = vadd.f32 -0.5, %v4190_v58  ;;  %v4193_v16 = vld [vmem:[#allocation94_spill] sm:$0xff] }
 0x12e   : > { %4187 = vst [vmem:[#allocation25_spill] sm:$0xff] %v3286_v49  ;;  %v1730_v63 = vpop.eup %1729  ;;  %1741 = vtanh.f32 %v3170_v9  ;;  %v801_v24 = vmul.f32 0.5, %v1720_v22  ;;  %v802_v25 = vmul.f32 0.5, %v1722_v26  ;;  %v3299_v13 = vadd.f32 -0.5, %v4191_v4  ;;  %v4194_v9 = vld [vmem:[#allocation39_spill] sm:$0xff] }
 0x12f   : > { %4189 = vst [vmem:[#allocation26_spill] sm:$0xff] %v3292_v17  ;;  %v1732_v49 = vpop.eup %1731  ;;  %1743 = vtanh.f32 %v3172_v28  ;;  %v803_v36 = vmul.f32 0.5, %v1724_v61  ;;  %v3302_v0 = vadd.f32 0.5, %v798_v29  ;;  %v3305_v48 = vadd.f32 -0.5, %v4193_v16  ;;  %v4195_v61 = vld [vmem:[#allocation95_spill] sm:$0xff] }
 0x130   : > { %v1734_v60 = vpop.eup %1733  ;;  %1745 = vtanh.f32 %v3174_v21  ;;  %v804_v58 = vmul.f32 0.5, %v1726_v56  ;;  %v3308_v17 = vadd.f32 0.5, %v799_v30  ;;  %v3311_v22 = vadd.f32 -0.5, %v4194_v9 }
 0x131   : > { %4192 = vst [vmem:[#allocation27_spill] sm:$0xff] %v3302_v0  ;;  %v1736_v26 = vpop.eup %1735  ;;  %1747 = vtanh.f32 %v3176_v6  ;;  %v805_v4 = vmul.f32 0.5, %v1728_v44  ;;  %v3314_v28 = vadd.f32 0.5, %v800_v19  ;;  %v3317_v29 = vadd.f32 -0.5, %v4195_v61 }
 0x132   : > { %v1738_v16 = vpop.eup %1737  ;;  %1749 = vtanh.f32 %v3178_v5  ;;  %v3320_v0 = vadd.f32 0.5, %v801_v24  ;;  %v3322_v21 = vadd.f32 0.5, %v802_v25  ;;  %v3325_v56 = vmul.f32 10.0, %v3193_v45 }
 0x133   : > { %v1740_v30 = vpop.eup %1739  ;;  %1751 = vtanh.f32 %v3180_v14  ;;  %v806_v6 = vmul.f32 0.5, %v1730_v63  ;;  %v3328_v44 = vadd.f32 0.5, %v803_v36  ;;  %v3331_v19 = vmul.f32 10.0, %v3196_v46 }
 0x134   : > { %v1742_v9 = vpop.eup %1741  ;;  %1753 = vtanh.f32 %v3182_v35  ;;  %v807_v5 = vmul.f32 0.5, %v1732_v49  ;;  %v3334_v24 = vadd.f32 0.5, %v804_v58  ;;  %v3337_v25 = vmul.f32 10.0, %v3199_v47 }
 0x135   : > { %v1744_v45 = vpop.eup %1743  ;;  %1755 = vtanh.f32 %v3184_v39  ;;  %v808_v61 = vmul.f32 0.5, %v1734_v60  ;;  %v3340_v14 = vadd.f32 0.5, %v805_v4  ;;  %v3343_v63 = vmul.f32 10.0, %v3202_v50 }
 0x136   : > { %4196 = vst [vmem:[#allocation28_spill] sm:$0xff] %v3334_v24  ;;  %v1746_v46 = vpop.eup %1745  ;;  %1757 = vtanh.f32 %v3186_v40  ;;  %v809_v36 = vmul.f32 0.5, %v1736_v26  ;;  %v810_v35 = vmul.f32 0.5, %v1738_v16  ;;  %v3347_v49 = vmul.f32 10.0, %v3205_v51 }
 0x137   : > { %4197 = vst [vmem:[#allocation29_spill] sm:$0xff] %v3340_v14  ;;  %v1748_v58 = vpop.eup %1747  ;;  %1759 = vtanh.f32 %v3188_v41  ;;  %v811_v47 = vmul.f32 0.5, %v1740_v30  ;;  %v3350_v24 = vadd.f32 0.5, %v806_v6  ;;  %v3353_v39 = vmul.f32 10.0, %v3208_v52 }
 0x138   : > { %v1750_v60 = vpop.eup %1749  ;;  %1761 = vtanh.f32 %v3190_v42  ;;  %v812_v50 = vmul.f32 0.5, %v1742_v9  ;;  %v813_v4 = vmul.f32 0.5, %v1744_v45  ;;  %v3356_v40 = vadd.f32 0.5, %v807_v5 }
 0x139   : > { %4198 = vst [vmem:[#allocation30_spill] sm:$0xff] %v3350_v24  ;;  %v1752_v26 = vpop.eup %1751  ;;  %v814_v16 = vmul.f32 0.5, %v1746_v46  ;;  %v3358_v51 = vadd.f32 0.5, %v808_v61  ;;  %v893_v14 = vmul.f32 10.0, %v3211_v54  ;;  %v894_v41 = vmul.f32 10.0, %v3214_v38 }
 0x13a   : > { %4199 = vst [vmem:[#allocation31_spill] sm:$0xff] %v3356_v40  ;;  %v1754_v30 = vpop.eup %1753  ;;  %v815_v6 = vmul.f32 0.5, %v1748_v58  ;;  %v3362_v24 = vadd.f32 0.5, %v809_v36  ;;  %v3364_v52 = vadd.f32 0.5, %v810_v35  ;;  %v895_v42 = vmul.f32 10.0, %v3217_v55 }
 0x13b   : > { %4200 = vst [vmem:[#allocation32_spill] sm:$0xff] %v3358_v51  ;;  %v1756_v9 = vpop.eup %1755  ;;  %v816_v45 = vmul.f32 0.5, %v1750_v60  ;;  %v3367_v5 = vadd.f32 0.5, %v811_v47  ;;  %v896_v46 = vmul.f32 10.0, %v3220_v33  ;;  %v897_v61 = vmul.f32 10.0, %v3223_v20 }
 0x13c   : > { %4201 = vst [vmem:[#allocation33_spill] sm:$0xff] %v3364_v52  ;;  %v1758_v51 = vpop.eup %1757  ;;  %v817_v54 = vmul.f32 0.5, %v1752_v26  ;;  %v3371_v40 = vadd.f32 0.5, %v812_v50  ;;  %v3373_v38 = vadd.f32 0.5, %v813_v4  ;;  %v898_v36 = vmul.f32 10.0, %v3226_v18 }
 0x13d   : > { %4202 = vst [vmem:[#allocation34_spill] sm:$0xff] %v3367_v5  ;;  %v1760_v35 = vpop.eup %1759  ;;  %v818_v58 = vmul.f32 0.5, %v1754_v30  ;;  %v3376_v52 = vadd.f32 0.5, %v814_v16  ;;  %v899_v55 = vmul.f32 10.0, %v3229_v7  ;;  %v900_v47 = vmul.f32 10.0, %v3232_v59 }
 0x13e   : > { %v1762_v60 = vpop.eup %1761  ;;  %v819_v33 = vmul.f32 0.5, %v1756_v9  ;;  %v3380_v5 = vadd.f32 0.5, %v815_v6  ;;  %v901_v20 = vmul.f32 10.0, %v3235_v32  ;;  %v902_v50 = vmul.f32 10.0, %v3238_v27 }
 0x13f   : > { %4203 = vst [vmem:[#allocation35_spill] sm:$0xff] %v3376_v52  ;;  %v820_v4 = vmul.f32 0.5, %v1758_v51  ;;  %v3384_v26 = vadd.f32 0.5, %v816_v45  ;;  %v903_v18 = vmul.f32 10.0, %v3241_v31  ;;  %v904_v16 = vmul.f32 10.0, %v3244_v62  ;;  %v4205_v45 = vld [vmem:[#allocation72_spill] sm:$0xff] }
 0x140   : > { %v821_v30 = vmul.f32 0.5, %v1760_v35  ;;  %v3388_v52 = vadd.f32 0.5, %v817_v54  ;;  %v905_v7 = vmul.f32 10.0, %v3247_v3  ;;  %v906_v59 = vmul.f32 10.0, %v3250_v10  ;;  %v4206_v54 = vld [vmem:[#allocation73_spill] sm:$0xff] }
 0x141   : > { %v822_v6 = vmul.f32 0.5, %v1762_v60  ;;  %v3392_v9 = vadd.f32 0.5, %v818_v58  ;;  %v907_v32 = vmul.f32 10.0, %v3254_v53  ;;  %v908_v27 = vmul.f32 10.0, %v3257_v43 }
 0x142   : > { %v3396_v51 = vadd.f32 0.5, %v819_v33  ;;  %v909_v31 = vmul.f32 10.0, %v3263_v1  ;;  %v1047_v62 = vmul.f32 %v3260_v11, %v4205_v45  ;;  %v1048_v35 = vmul.f32 %v3266_v15, %v4206_v54 }
 0x143   : > { %v3403_v3 = vadd.f32 0.5, %v820_v4  ;;  %v910_v10 = vmul.f32 10.0, %v3269_v8  ;;  %v911_v58 = vmul.f32 10.0, %v3277_v23  ;;  %v912_v53 = vmul.f32 10.0, %v3283_v57 }
 0x144   : > { %4204 = vst [vmem:[#allocation36_spill] sm:$0xff] %v3396_v51  ;;  %v3408_v60 = vadd.f32 0.5, %v821_v30  ;;  %v913_v43 = vmul.f32 10.0, %v3289_v37  ;;  %v914_v1 = vmul.f32 10.0, %v3295_v34  ;;  %v915_v33 = vmul.f32 10.0, %v3299_v13  ;;  %v4210_v30 = vld [vmem:[#allocation74_spill] sm:$0xff] }
 0x145   : > { %4207 = vst [vmem:[#allocation92_spill] sm:$0xff] %v3403_v3  ;;  %v3413_v11 = vadd.f32 0.5, %v822_v6  ;;  %v916_v15 = vmul.f32 10.0, %v3305_v48  ;;  %v917_v4 = vmul.f32 10.0, %v3311_v22  ;;  %v918_v8 = vmul.f32 10.0, %v3317_v29 }
 0x146   : > { %4208 = vst [vmem:[#allocation37_spill] sm:$0xff] %v3408_v60  ;;  %v919_v23 = vmul.f32 0.5, %v3325_v56  ;;  %v920_v57 = vmul.f32 0.5, %v3331_v19  ;;  %v1049_v60 = vmul.f32 %v3272_v12, %v4210_v30  ;;  %v1079_v37 = vadd.f32 %v1048_v35, %v1047_v62 }
 0x147   : > { %4209 = vst [vmem:[#allocation93_spill] sm:$0xff] %v3413_v11  ;;  %v921_v34 = vmul.f32 0.5, %v3337_v25  ;;  %v922_v13 = vmul.f32 0.5, %v3343_v63  ;;  %v923_v6 = vmul.f32 0.5, %v3347_v49  ;;  %v924_v48 = vmul.f32 0.5, %v3353_v39  ;;  %v4211_v49 = vld [vmem:[#allocation75_spill] sm:$0xff] }
 0x148   : > { %v925_v11 = vmul.f32 0.5, %v893_v14  ;;  %v926_v22 = vmul.f32 0.5, %v894_v41  ;;  %v927_v3 = vmul.f32 0.5, %v895_v42  ;;  %v3426_v29 = vmul.f32 0.5, %v896_v46 }
 0x149   : > { %v3428_v56 = vmul.f32 0.5, %v897_v61  ;;  %v3430_v19 = vmul.f32 0.5, %v898_v36  ;;  %v3432_v51 = vmul.f32 0.5, %v899_v55  ;;  %v3434_v12 = vmul.f32 0.5, %v900_v47  ;;  %v4212_v47 = vld [vmem:[#allocation76_spill] sm:$0xff] }
 0x14a   : > { %v3436_v25 = vmul.f32 0.5, %v901_v20  ;;  %v3438_v63 = vmul.f32 0.5, %v902_v50  ;;  %v1050_v39 = vmul.f32 %v3274_v2, %v4211_v49  ;;  %v1080_v14 = vadd.f32 %v1079_v37, %v1049_v60  ;;  %v4213_v20 = vld [vmem:[#allocation24_spill] sm:$0xff] }
 0x14b   : > { %v3442_v41 = vmul.f32 0.5, %v903_v18  ;;  %v3444_v42 = vmul.f32 0.5, %v904_v16  ;;  %1763 = vtanh.f32 %v919_v23  ;;  %v1117_v46 = vadd.f32 %v4206_v54, %v4205_v45  ;;  %v4216_v45 = vld [vmem:[#allocation77_spill] sm:$0xff] }
 0x14c   : > { %v3448_v61 = vmul.f32 0.5, %v905_v7  ;;  %v3450_v36 = vmul.f32 0.5, %v906_v59  ;;  %v3452_v55 = vmul.f32 0.5, %v907_v32  ;;  %v1051_v50 = vmul.f32 %v4213_v20, %v4212_v47  ;;  %v4217_v7 = vld [vmem:[#allocation25_spill] sm:$0xff] }
 0x14d   : > { %v3456_v62 = vmul.f32 0.5, %v908_v27  ;;  %v3458_v2 = vmul.f32 0.5, %v909_v31  ;;  %v3460_v18 = vmul.f32 0.5, %v910_v10  ;;  %1765 = vtanh.f32 %v920_v57  ;;  %v4221_v31 = vld [vmem:[#allocation78_spill] sm:$0xff] }
 0x14e   : > { %v3462_v16 = vmul.f32 0.5, %v911_v58  ;;  %1767 = vtanh.f32 %v921_v34  ;;  %v1052_v54 = vmul.f32 %v4217_v7, %v4216_v45  ;;  %v1081_v59 = vadd.f32 %v1080_v14, %v1050_v39  ;;  %v4222_v10 = vld [vmem:[#allocation26_spill] sm:$0xff] }
 0x14f   : > { %4214 = vst [vmem:[#allocation38_spill] sm:$0xff] %v3460_v18  ;;  %v3466_v35 = vmul.f32 0.5, %v912_v53  ;;  %v3468_v32 = vmul.f32 0.5, %v913_v43  ;;  %1769 = vtanh.f32 %v922_v13  ;;  %v1118_v27 = vadd.f32 %v1117_v46, %v4210_v30  ;;  %v4227_v30 = vld [vmem:[#allocation79_spill] sm:$0xff]  ;;  %v4229_v46 = vld [vmem:[#allocation12_spill] sm:$0xff] }
 0x150   : > { %4215 = vst [vmem:[#allocation94_spill] sm:$0xff] %v3462_v16  ;;  %v3471_v60 = vmul.f32 0.5, %v914_v1  ;;  %1771 = vtanh.f32 %v923_v6  ;;  %v1053_v23 = vmul.f32 %v4222_v10, %v4221_v31  ;;  %v1082_v58 = vadd.f32 %v1081_v59, %v1051_v50  ;;  %v4228_v1 = vld [vmem:[#allocation27_spill] sm:$0xff]  ;;  %v4230_v50 = vld [vmem:[#allocation80_spill] sm:$0xff]  ;;  %v4233_v10 = vld [vmem:[#allocation14_spill] sm:$0xff] }
 0x151   : > { %4218 = vst [vmem:[#allocation39_spill] sm:$0xff] %v3466_v35  ;;  %v1764_v57 = vpop.eup %1763  ;;  %v3475_v37 = vmul.f32 0.5, %v915_v33  ;;  %v3477_v34 = vmul.f32 0.5, %v916_v15  ;;  %v3479_v39 = vmul.f32 0.5, %v917_v4  ;;  %v1119_v53 = vadd.f32 %v1118_v27, %v4211_v49  ;;  %v4231_v15 = vld [vmem:[#allocation13_spill] sm:$0xff]  ;;  %v4253_v16 = vld [vmem:[#allocation87_spill] sm:$0xff] }
 0x152   : > { %4219 = vst [vmem:[#allocation95_spill] sm:$0xff] %v3468_v32  ;;  %v3482_v43 = vmul.f32 0.5, %v918_v8  ;;  %1773 = vtanh.f32 %v924_v48  ;;  %v1054_v13 = vmul.f32 %v4228_v1, %v4227_v30  ;;  %v1083_v6 = vadd.f32 %v1082_v58, %v1052_v54  ;;  %v4232_v48 = vld [vmem:[#allocation81_spill] sm:$0xff]  ;;  %v4234_v58 = vld [vmem:[#allocation82_spill] sm:$0xff]  ;;  %v4235_v1 = vld [vmem:[#allocation28_spill] sm:$0xff] }
 0x153   : > { %4220 = vst [vmem:[#allocation72_spill] sm:$0xff] %v3471_v60  ;;  %v1766_v14 = vpop.eup %1765  ;;  %v1055_v20 = vmul.f32 %v3308_v17, %v4229_v46  ;;  %v1056_v33 = vmul.f32 %v3314_v28, %v4230_v50  ;;  %v1057_v4 = vmul.f32 %v3320_v0, %v4231_v15  ;;  %v1120_v7 = vadd.f32 %v1119_v53, %v4212_v47  ;;  %v4236_v53 = vld [vmem:[#allocation15_spill] sm:$0xff] }
 0x154   : > { %4223 = vst [vmem:[#allocation73_spill] sm:$0xff] %v3475_v37  ;;  %v1768_v49 = vpop.eup %1767  ;;  %1775 = vtanh.f32 %v925_v11  ;;  %v983_v8 = vmul.f32 0.5, %v1764_v57  ;;  %v1058_v59 = vmul.f32 %v3322_v21, %v4232_v48  ;;  %v1084_v27 = vadd.f32 %v1083_v6, %v1053_v23  ;;  %v4237_v11 = vld [vmem:[#allocation29_spill] sm:$0xff]  ;;  %v4238_v23 = vld [vmem:[#allocation83_spill] sm:$0xff]  ;;  %v4239_v6 = vld [vmem:[#allocation30_spill] sm:$0xff] }
 0x155   : > { %4224 = vst [vmem:[#allocation74_spill] sm:$0xff] %v3477_v34  ;;  %v1770_v54 = vpop.eup %1769  ;;  %1777 = vtanh.f32 %v926_v22  ;;  %v1059_v17 = vmul.f32 %v3328_v44, %v4233_v10  ;;  %v1060_v28 = vmul.f32 %v4235_v1, %v4234_v58  ;;  %v984_v47 = vmul.f32 0.5, %v1766_v14  ;;  %v4240_v34 = vld [vmem:[#allocation16_spill] sm:$0xff]  ;;  %v4241_v44 = vld [vmem:[#allocation31_spill] sm:$0xff] }
 0x156   : > { %4225 = vst [vmem:[#allocation75_spill] sm:$0xff] %v3479_v39  ;;  %v1772_v0 = vpop.eup %1771  ;;  %1779 = vtanh.f32 %v927_v3  ;;  %v3502_v57 = vmul.f32 %v4237_v11, %v4236_v53  ;;  %v1085_v39 = vadd.f32 %v1084_v27, %v1054_v13  ;;  %v985_v21 = vmul.f32 0.5, %v1768_v49  ;;  %v4242_v49 = vld [vmem:[#allocation84_spill] sm:$0xff] }
 0x157   : > { %4226 = vst [vmem:[#allocation76_spill] sm:$0xff] %v3482_v43  ;;  %v1121_v43 = vadd.f32 %v1120_v7, %v4216_v45  ;;  %v3506_v22 = vmul.f32 %v4239_v6, %v4238_v23  ;;  %v3510_v37 = vmul.f32 %v4241_v44, %v4240_v34  ;;  %1781 = vtanh.f32 %v3426_v29  ;;  %v4243_v27 = vld [vmem:[#allocation32_spill] sm:$0xff] }
 0x158   : > { %v1774_v45 = vpop.eup %1773  ;;  %v986_v3 = vmul.f32 0.5, %v1770_v54  ;;  %v1015_v14 = vadd.f32 0.5, %v983_v8  ;;  %v1086_v7 = vadd.f32 %v1085_v39, %v1055_v20  ;;  %1783 = vtanh.f32 %v3428_v56  ;;  %v4245_v56 = vld [vmem:[#allocation85_spill] sm:$0xff] }
 0x159   : > { %v1122_v1 = vadd.f32 %v1121_v43, %v4221_v31  ;;  %v987_v13 = vmul.f32 0.5, %v1772_v0  ;;  %v3517_v11 = vmul.f32 %v4243_v27, %v4242_v49  ;;  %1785 = vtanh.f32 %v3430_v19  ;;  %v4244_v31 = vld [vmem:[#allocation17_spill] sm:$0xff]  ;;  %v4247_v19 = vld [vmem:[#allocation18_spill] sm:$0xff] }
 0x15a   : > { %v1776_v60 = vpop.eup %1775  ;;  %v1016_v44 = vadd.f32 0.5, %v984_v47  ;;  %v3523_v43 = vmul.f32 %v3362_v24, %v4244_v31  ;;  %v1087_v29 = vadd.f32 %v1086_v7, %v1056_v33  ;;  %v988_v39 = vmul.f32 0.5, %v1774_v45  ;;  %v4246_v54 = vld [vmem:[#allocation33_spill] sm:$0xff]  ;;  %v4248_v47 = vld [vmem:[#allocation34_spill] sm:$0xff] }
 0x15b   : > { %v1123_v6 = vadd.f32 %v1122_v1, %v4227_v30  ;;  %v1778_v8 = vpop.eup %1777  ;;  %v1017_v20 = vadd.f32 0.5, %v985_v21  ;;  %v3527_v0 = vmul.f32 %v4246_v54, %v4245_v56  ;;  %1787 = vtanh.f32 %v3432_v51 }
 0x15c   : > { %v1780_v32 = vpop.eup %1779  ;;  %v1018_v30 = vadd.f32 0.5, %v986_v3  ;;  %v3533_v1 = vmul.f32 %v4248_v47, %v4247_v19  ;;  %v1088_v24 = vadd.f32 %v1087_v29, %v1057_v4  ;;  %1789 = vtanh.f32 %v3434_v12  ;;  %v4250_v4 = vld [vmem:[#allocation40_spill] sm:$0xff]  ;;  %v4251_v12 = vld [vmem:[#allocation41_spill] sm:$0xff] }
 0x15d   : > { %v1124_v27 = vadd.f32 %v1123_v6, %v4229_v46  ;;  %v989_v33 = vmul.f32 0.5, %v1776_v60  ;;  %v1019_v45 = vadd.f32 0.5, %v987_v13  ;;  %v1782_v7 = vpop.eup %1781  ;;  %1791 = vtanh.f32 %v3436_v25  ;;  %v4249_v46 = vld [vmem:[#allocation86_spill] sm:$0xff] }
 0x15e   : > { %v990_v54 = vmul.f32 0.5, %v1778_v8  ;;  %v3540_v6 = vmul.f32 %v3371_v40, %v4249_v46  ;;  %v1089_v51 = vadd.f32 %v1088_v24, %v1058_v59  ;;  %v1784_v3 = vpop.eup %1783  ;;  %v1020_v35 = vadd.f32 0.5, %v988_v39  ;;  %v4254_v59 = vld [vmem:[#allocation35_spill] sm:$0xff]  ;;  %v4255_v39 = vld [vmem:[#allocation42_spill] sm:$0xff] }
 0x15f   : > { %v1125_v21 = vadd.f32 %v1124_v27, %v4230_v50  ;;  %v1155_v29 = vmul.f32 %v1015_v14, %v4250_v4  ;;  %v1156_v60 = vmul.f32 %v1016_v44, %v4251_v12  ;;  %v1786_v13 = vpop.eup %1785  ;;  %1793 = vtanh.f32 %v3438_v63  ;;  %v4252_v27 = vld [vmem:[#allocation19_spill] sm:$0xff] }
 0x160   : > { %v991_v50 = vmul.f32 0.5, %v1780_v32  ;;  %v3548_v25 = vmul.f32 %v3373_v38, %v4252_v27  ;;  %v1090_v8 = vadd.f32 %v1089_v51, %v1059_v17  ;;  %v1021_v40 = vadd.f32 0.5, %v989_v33  ;;  %v4256_v27 = vld [vmem:[#allocation43_spill] sm:$0xff] }
 0x161   : > { %v1126_v47 = vadd.f32 %v1125_v21, %v4231_v15  ;;  %v3552_v24 = vmul.f32 %v4254_v59, %v4253_v16  ;;  %v1157_v14 = vmul.f32 %v1017_v20, %v4255_v39  ;;  %v1788_v21 = vpop.eup %1787  ;;  %1795 = vtanh.f32 %v3442_v41  ;;  %v4257_v20 = vld [vmem:[#allocation20_spill] sm:$0xff] }
 0x162   : > { %v992_v44 = vmul.f32 0.5, %v1782_v7  ;;  %v1022_v63 = vadd.f32 0.5, %v990_v54  ;;  %v1091_v32 = vadd.f32 %v1090_v8, %v1060_v28  ;;  %v1790_v18 = vpop.eup %1789  ;;  %v1158_v17 = vmul.f32 %v1018_v30, %v4256_v27  ;;  %v4258_v7 = vld [vmem:[#allocation44_spill] sm:$0xff] }
 0x163   : > { %v1127_v15 = vadd.f32 %v1126_v47, %v4232_v48  ;;  %v1187_v33 = vadd.f32 %v1156_v60, %v1155_v29  ;;  %v1225_v51 = vadd.f32 %v4251_v12, %v4250_v4  ;;  %v1792_v59 = vpop.eup %1791  ;;  %1797 = vtanh.f32 %v3444_v42  ;;  %v4259_v12 = vld [vmem:[#allocation88_spill] sm:$0xff] }
 0x164   : > { %v993_v48 = vmul.f32 0.5, %v1784_v3  ;;  %v3564_v47 = vmul.f32 %v3380_v5, %v4257_v20  ;;  %v1092_v41 = vadd.f32 %v1091_v32, %v3502_v57  ;;  %1799 = vtanh.f32 %v3448_v61  ;;  %v4260_v57 = vld [vmem:[#allocation45_spill] sm:$0xff]  ;;  %v4262_v32 = vld [vmem:[#allocation46_spill] sm:$0xff] }
 0x165   : > { %v1128_v38 = vadd.f32 %v1127_v15, %v4233_v10  ;;  %v1159_v10 = vmul.f32 %v1019_v45, %v4258_v7  ;;  %v1188_v54 = vadd.f32 %v1187_v33, %v1157_v14  ;;  %v1226_v30 = vadd.f32 %v1225_v51, %v4255_v39  ;;  %v1794_v29 = vpop.eup %1793  ;;  %v4261_v14 = vld [vmem:[#allocation21_spill] sm:$0xff] }
 0x166   : > { %v1023_v4 = vadd.f32 0.5, %v991_v50  ;;  %v3573_v42 = vmul.f32 %v3384_v26, %v4259_v12  ;;  %v1093_v5 = vadd.f32 %v1092_v41, %v3506_v22  ;;  %v1160_v60 = vmul.f32 %v1020_v35, %v4260_v57  ;;  %v4264_v41 = vld [vmem:[#allocation89_spill] sm:$0xff] }
 0x167   : > { %v1129_v28 = vadd.f32 %v1128_v38, %v4234_v58  ;;  %v1189_v58 = vadd.f32 %v1188_v54, %v1158_v17  ;;  %v1227_v45 = vadd.f32 %v1226_v30, %v4256_v27  ;;  %v1796_v8 = vpop.eup %1795  ;;  %v994_v15 = vmul.f32 0.5, %v1786_v13  ;;  %v4267_v54 = vld [vmem:[#allocation36_spill] sm:$0xff]  ;;  %v4268_v30 = vld [vmem:[#allocation49_spill] sm:$0xff] }
 0x168   : > { %v1024_v39 = vadd.f32 0.5, %v992_v44  ;;  %v3581_v61 = vmul.f32 %v3388_v52, %v4261_v14  ;;  %v1094_v50 = vadd.f32 %v1093_v5, %v3510_v37  ;;  %v1161_v22 = vmul.f32 %v1021_v40, %v4262_v32  ;;  %v4263_v52 = vld [vmem:[#allocation47_spill] sm:$0xff] }
 0x169   : > { %v1130_v3 = vadd.f32 %v1129_v28, %v4236_v53  ;;  %v1190_v38 = vadd.f32 %v1189_v58, %v1159_v10  ;;  %v1228_v53 = vadd.f32 %v1227_v45, %v4258_v7  ;;  %v1798_v35 = vpop.eup %1797  ;;  %1801 = vtanh.f32 %v3450_v36  ;;  %v4266_v10 = vld [vmem:[#allocation22_spill] sm:$0xff]  ;;  %v4270_v58 = vld [vmem:[#allocation92_spill] sm:$0xff] }
 0x16a   : > { %v995_v27 = vmul.f32 0.5, %v1788_v21  ;;  %v1025_v17 = vadd.f32 0.5, %v993_v48  ;;  %v1095_v13 = vadd.f32 %v1094_v50, %v3517_v11  ;;  %v1162_v33 = vmul.f32 %v1022_v63, %v4263_v52  ;;  %v4265_v11 = vld [vmem:[#allocation48_spill] sm:$0xff]  ;;  %v4271_v50 = vld [vmem:[#allocation50_spill] sm:$0xff] }
 0x16b   : > { %v1131_v26 = vadd.f32 %v1130_v3, %v4238_v23  ;;  %v1191_v51 = vadd.f32 %v1190_v38, %v1160_v60  ;;  %v1229_v37 = vadd.f32 %v1228_v53, %v4260_v57  ;;  %v1800_v23 = vpop.eup %1799  ;;  %1803 = vtanh.f32 %v3452_v55  ;;  %v4269_v60 = vld [vmem:[#allocation90_spill] sm:$0xff]  ;;  %v4272_v53 = vld [vmem:[#allocation51_spill] sm:$0xff] }
 0x16c   : > { %v996_v40 = vmul.f32 0.5, %v1790_v18  ;;  %v3595_v28 = vmul.f32 %v3392_v9, %v4264_v41  ;;  %v1096_v36 = vadd.f32 %v1095_v13, %v3523_v43  ;;  %v1163_v48 = vmul.f32 %v1023_v4, %v4265_v11 }
 0x16d   : > { %v1132_v44 = vadd.f32 %v1131_v26, %v4240_v34  ;;  %v1192_v34 = vadd.f32 %v1191_v51, %v1161_v22  ;;  %v1230_v63 = vadd.f32 %v1229_v37, %v4262_v32  ;;  %1805 = vtanh.f32 %v3456_v62  ;;  %v4275_v37 = vld [vmem:[#allocation52_spill] sm:$0xff] }
 0x16e   : > { %v1026_v7 = vadd.f32 0.5, %v994_v15  ;;  %v3604_v55 = vmul.f32 %v4267_v54, %v4266_v10  ;;  %v1097_v18 = vadd.f32 %v1096_v36, %v3527_v0  ;;  %v1164_v43 = vmul.f32 %v1024_v39, %v4268_v30  ;;  %v4276_v36 = vld [vmem:[#allocation38_spill] sm:$0xff] }
 0x16f   : > { %v1133_v21 = vadd.f32 %v1132_v44, %v4242_v49  ;;  %v1193_v5 = vadd.f32 %v1192_v34, %v1162_v33  ;;  %v1231_v49 = vadd.f32 %v1230_v63, %v4263_v52  ;;  %v1802_v4 = vpop.eup %1801  ;;  %v997_v3 = vmul.f32 0.5, %v1792_v59  ;;  %v4273_v52 = vld [vmem:[#allocation23_spill] sm:$0xff]  ;;  %v4274_v33 = vld [vmem:[#allocation37_spill] sm:$0xff] }
 0x170   : > { %v1027_v57 = vadd.f32 0.5, %v995_v27  ;;  %v3612_v62 = vmul.f32 %v4270_v58, %v4269_v60  ;;  %v1098_v45 = vadd.f32 %v1097_v18, %v3533_v1  ;;  %v1165_v0 = vmul.f32 %v1025_v17, %v4271_v50  ;;  %v4278_v63 = vld [vmem:[#allocation53_spill] sm:$0xff] }
 0x171   : > { %v1134_v9 = vadd.f32 %v1133_v21, %v4244_v31  ;;  %v1194_v26 = vadd.f32 %v1193_v5, %v1163_v48  ;;  %v1232_v31 = vadd.f32 %v1231_v49, %v4265_v11  ;;  %v1804_v39 = vpop.eup %1803  ;;  %1807 = vtanh.f32 %v3458_v2  ;;  %v4277_v48 = vld [vmem:[#allocation19_spill] sm:$0xff] }
 0x172   : > { %v998_v32 = vmul.f32 0.5, %v1794_v29  ;;  %v1028_v22 = vadd.f32 0.5, %v996_v40  ;;  %v1099_v59 = vadd.f32 %v1098_v45, %v3540_v6  ;;  %v1166_v27 = vmul.f32 %v1026_v7, %v4272_v53  ;;  %v4282_v45 = vld [vmem:[#allocation94_spill] sm:$0xff] }
 0x173   : > { %v1135_v15 = vadd.f32 %v1134_v9, %v4245_v56  ;;  %v1195_v13 = vadd.f32 %v1194_v26, %v1164_v43  ;;  %v1233_v1 = vadd.f32 %v1232_v31, %v4268_v30  ;;  %v1806_v56 = vpop.eup %1805  ;;  %v999_v44 = vmul.f32 0.5, %v1796_v8  ;;  %v4279_v30 = vld [vmem:[#allocation91_spill] sm:$0xff]  ;;  %v4280_v43 = vld [vmem:[#allocation93_spill] sm:$0xff] }
 0x174   : > { %v1029_v17 = vadd.f32 0.5, %v997_v3  ;;  %v3625_v51 = vmul.f32 %v4274_v33, %v4273_v52  ;;  %v1100_v2 = vadd.f32 %v1099_v59, %v3548_v25  ;;  %v1167_v6 = vmul.f32 %v1027_v57, %v4275_v37  ;;  %v4281_v3 = vld [vmem:[#allocation54_spill] sm:$0xff]  ;;  %v4283_v26 = vld [vmem:[#allocation55_spill] sm:$0xff] }
 0x175   : > { %v1136_v38 = vadd.f32 %v1135_v15, %v4247_v19  ;;  %v1196_v40 = vadd.f32 %v1195_v13, %v1165_v0  ;;  %v1234_v19 = vadd.f32 %v1233_v1, %v4271_v50  ;;  %1809 = vtanh.f32 %v4276_v36 }
 0x176   : > { %v1000_v21 = vmul.f32 0.5, %v1798_v35  ;;  %v1030_v11 = vadd.f32 0.5, %v998_v32  ;;  %v1101_v8 = vadd.f32 %v1100_v2, %v3552_v24  ;;  %v1168_v7 = vmul.f32 %v1028_v22, %v4278_v63 }
 0x177   : > { %v1137_v29 = vadd.f32 %v1136_v38, %v4249_v46  ;;  %v1197_v54 = vadd.f32 %v1196_v40, %v1166_v27  ;;  %v1235_v25 = vadd.f32 %v1234_v19, %v4272_v53  ;;  %v1808_v18 = vpop.eup %1807  ;;  %v1001_v46 = vmul.f32 0.5, %v1800_v23 }
 0x178   : > { %v1031_v9 = vadd.f32 0.5, %v999_v44  ;;  %v1078_v5 = vmul.f32 %v4280_v43, %v4279_v30  ;;  %v1102_v49 = vadd.f32 %v1101_v8, %v3564_v47  ;;  %v1169_v57 = vmul.f32 %v1029_v17, %v4281_v3 }
 0x179   : > { %v1138_v34 = vadd.f32 %v1137_v29, %v4277_v48  ;;  %v1198_v24 = vadd.f32 %v1197_v54, %v1167_v6  ;;  %v1236_v58 = vadd.f32 %v1235_v25, %v4275_v37  ;;  %1811 = vtanh.f32 %v4282_v45  ;;  %v4287_v29 = vld [vmem:[#allocation57_spill] sm:$0xff]  ;;  %v4291_v25 = vld [vmem:[#allocation59_spill] sm:$0xff] }
 0x17a   : > { %v1002_v15 = vmul.f32 0.5, %v1802_v4  ;;  %v1032_v50 = vadd.f32 0.5, %v1000_v21  ;;  %v1103_v0 = vadd.f32 %v1102_v49, %v3573_v42  ;;  %v1170_v31 = vmul.f32 %v1030_v11, %v4283_v26  ;;  %v4285_v4 = vld [vmem:[#allocation56_spill] sm:$0xff]  ;;  %v4290_v48 = vld [vmem:[#allocation73_spill] sm:$0xff]  ;;  %v4294_v45 = vld [vmem:[#allocation75_spill] sm:$0xff] }
 0x17b   : > { %v1139_v35 = vadd.f32 %v1138_v34, %v4253_v16  ;;  %v1199_v32 = vadd.f32 %v1198_v24, %v1168_v7  ;;  %v1237_v47 = vadd.f32 %v1236_v58, %v4278_v63  ;;  %v1810_v22 = vpop.eup %1809  ;;  %v4284_v16 = vld [vmem:[#allocation39_spill] sm:$0xff]  ;;  %v1003_v59 = vmul.f32 0.5, %v1804_v39 }
 0x17c   : > { %1813 = vtanh.f32 %v4284_v16  ;;  %v1033_v38 = vadd.f32 0.5, %v1001_v46  ;;  %v1104_v53 = vadd.f32 %v1103_v0, %v3581_v61  ;;  %v1171_v13 = vmul.f32 %v1031_v9, %v4285_v4  ;;  %v4292_v9 = vld [vmem:[#allocation74_spill] sm:$0xff] }
 0x17d   : > { %v1140_v23 = vadd.f32 %v1139_v35, %v4257_v20  ;;  %v1200_v1 = vadd.f32 %v1199_v32, %v1169_v57  ;;  %v1238_v42 = vadd.f32 %v1237_v47, %v4281_v3  ;;  %v4286_v20 = vld [vmem:[#allocation95_spill] sm:$0xff]  ;;  %v1004_v44 = vmul.f32 0.5, %v1806_v56  ;;  %v4289_v56 = vld [vmem:[#allocation58_spill] sm:$0xff]  ;;  %v4293_v57 = vld [vmem:[#allocation60_spill] sm:$0xff] }
 0x17e   : > { %1815 = vtanh.f32 %v4286_v20  ;;  %v1034_v17 = vadd.f32 0.5, %v1002_v15  ;;  %v1105_v33 = vadd.f32 %v1104_v53, %v3595_v28  ;;  %v1172_v39 = vmul.f32 %v1032_v50, %v4287_v29  ;;  %v4297_v53 = vld [vmem:[#allocation62_spill] sm:$0xff] }
 0x17f   : > { %v1141_v27 = vadd.f32 %v1140_v23, %v4259_v12  ;;  %v1201_v37 = vadd.f32 %v1200_v1, %v1170_v31  ;;  %v1239_v61 = vadd.f32 %v1238_v42, %v4283_v26  ;;  %v1812_v6 = vpop.eup %1811  ;;  %v4288_v12 = vld [vmem:[#allocation72_spill] sm:$0xff]  ;;  %v1005_v40 = vmul.f32 0.5, %v1808_v18  ;;  %v4295_v26 = vld [vmem:[#allocation61_spill] sm:$0xff] }
 0x180   : > { %1817 = vtanh.f32 %v4288_v12  ;;  %v1035_v19 = vadd.f32 0.5, %v1003_v59  ;;  %v1106_v36 = vadd.f32 %v1105_v33, %v3604_v55  ;;  %v1173_v11 = vmul.f32 %v1033_v38, %v4289_v56 }
 0x181   : > { %v1142_v2 = vadd.f32 %v1141_v27, %v4261_v14  ;;  %v1202_v8 = vadd.f32 %v1201_v37, %v1171_v13  ;;  %v1240_v28 = vadd.f32 %v1239_v61, %v4285_v4  ;;  %1819 = vtanh.f32 %v4290_v48 }
 0x182   : > { %v1814_v14 = vpop.eup %1813  ;;  %v1006_v34 = vmul.f32 0.5, %v1810_v22  ;;  %v1036_v63 = vadd.f32 0.5, %v1004_v44  ;;  %v1107_v7 = vadd.f32 %v1106_v36, %v3612_v62  ;;  %v1174_v18 = vmul.f32 %v1034_v17, %v4291_v25  ;;  %v4298_v44 = vld [vmem:[#allocation63_spill] sm:$0xff] }
 0x183   : > { %v1143_v21 = vadd.f32 %v1142_v2, %v4264_v41  ;;  %v1203_v46 = vadd.f32 %v1202_v8, %v1172_v39  ;;  %v1241_v55 = vadd.f32 %v1240_v28, %v4287_v29  ;;  %1821 = vtanh.f32 %v4292_v9  ;;  %v4300_v28 = vld [vmem:[#allocation65_spill] sm:$0xff] }
 0x184   : > { %v1816_v41 = vpop.eup %1815  ;;  %v1007_v43 = vmul.f32 0.5, %v1812_v6  ;;  %v1037_v49 = vadd.f32 0.5, %v1005_v40  ;;  %v1108_v35 = vadd.f32 %v1107_v7, %v3625_v51  ;;  %v1175_v24 = vmul.f32 %v1035_v19, %v4293_v57  ;;  %v4299_v6 = vld [vmem:[#allocation64_spill] sm:$0xff] }
 0x185   : > { %v1144_v54 = vadd.f32 %v1143_v21, %v4266_v10  ;;  %v1204_v58 = vadd.f32 %v1203_v46, %v1173_v11  ;;  %v1242_v62 = vadd.f32 %v1241_v55, %v4289_v56  ;;  %1823 = vtanh.f32 %v4294_v45  ;;  %v4303_v45 = vld [vmem:[#allocation68_spill] sm:$0xff] }
 0x186   : > { %v1818_v10 = vpop.eup %1817  ;;  %v1008_v15 = vmul.f32 0.5, %v1814_v14  ;;  %v1038_v50 = vadd.f32 0.5, %v1006_v34  ;;  %v1109_v0 = vadd.f32 %v1108_v35, %v1078_v5  ;;  %v1176_v31 = vmul.f32 %v1036_v63, %v4295_v26 }
 0x187   : > { %v1145_v3 = vadd.f32 %v1144_v54, %v4269_v60  ;;  %v1205_v32 = vadd.f32 %v1204_v58, %v1174_v18  ;;  %v1243_v51 = vadd.f32 %v1242_v62, %v4291_v25  ;;  %v1820_v47 = vpop.eup %1819  ;;  %v4296_v60 = vld [vmem:[#allocation76_spill] sm:$0xff]  ;;  %v1009_v22 = vmul.f32 0.5, %v1816_v41  ;;  %v4301_v18 = vld [vmem:[#allocation66_spill] sm:$0xff] }
 0x188   : > { %1825 = vtanh.f32 %v4296_v60  ;;  %v1039_v16 = vadd.f32 0.5, %v1007_v43  ;;  %v1110_v59 = vrot.slane %v1109_v0, 4  ;;  %v1177_v27 = vmul.f32 %v1037_v49, %v4297_v53 }
 0x189   : > { %v1146_v23 = vadd.f32 %v1145_v3, %v4273_v52  ;;  %v1206_v4 = vadd.f32 %v1205_v32, %v1175_v24  ;;  %v1244_v5 = vadd.f32 %v1243_v51, %v4293_v57  ;;  %v1822_v13 = vpop.eup %1821  ;;  %v1010_v52 = vmul.f32 0.5, %v1818_v10  ;;  %v4302_v3 = vld [vmem:[#allocation67_spill] sm:$0xff] }
 0x18a   : > { %v1040_v1 = vadd.f32 0.5, %v1008_v15  ;;  %v1111_v42 = vadd.f32 %v1110_v59, %v1109_v0  ;;  %v1178_v17 = vmul.f32 %v1038_v50, %v4298_v44  ;;  %v1011_v39 = vmul.f32 0.5, %v1820_v47  ;;  %v4305_v47 = vld [vmem:[#allocation70_spill] sm:$0xff]  ;;  %v4306_v59 = vld [vmem:[#allocation71_spill] sm:$0xff] }
 0x18b   : > { %v1147_v38 = vadd.f32 %v1146_v23, %v4279_v30  ;;  %v1207_v33 = vadd.f32 %v1206_v4, %v1176_v31  ;;  %v1245_v2 = vadd.f32 %v1244_v5, %v4295_v26  ;;  %v1824_v29 = vpop.eup %1823  ;;  %v1041_v37 = vadd.f32 0.5, %v1009_v22  ;;  %v4304_v26 = vld [vmem:[#allocation69_spill] sm:$0xff] }
 0x18c   : > { %v1112_v30 = vrot.slane %v1111_v42, 2  ;;  %v1179_v12 = vmul.f32 %v1039_v16, %v4299_v6  ;;  %v1012_v21 = vmul.f32 0.5, %v1822_v13  ;;  %v1042_v56 = vadd.f32 0.5, %v1010_v52 }
 0x18d   : > { %v1148_v20 = vrot.slane %v1147_v38, 4  ;;  %v1208_v40 = vadd.f32 %v1207_v33, %v1177_v27  ;;  %v1246_v19 = vadd.f32 %v1245_v2, %v4297_v53  ;;  %v1180_v14 = vmul.f32 %v1040_v1, %v4300_v28 }
 0x18e   : > { %v1826_v36 = vpop.eup %1825  ;;  %v1113_v11 = vadd.f32 %v1112_v30, %v1111_v42  ;;  %v1013_v63 = vmul.f32 0.5, %v1824_v29  ;;  %v1043_v7 = vadd.f32 0.5, %v1011_v39  ;;  %v1181_v46 = vmul.f32 %v1041_v37, %v4301_v18 }
 0x18f   : > { %v1149_v61 = vadd.f32 %v1148_v20, %v1147_v38  ;;  %v1209_v48 = vadd.f32 %v1208_v40, %v1178_v17  ;;  %v1247_v34 = vadd.f32 %v1246_v19, %v4298_v44  ;;  %v1014_v9 = vmul.f32 0.5, %v1826_v36 }
 0x190   : > { %v1114_v54 = vrot.slane %v1113_v11, 1  ;;  %v1044_v43 = vadd.f32 0.5, %v1012_v21  ;;  %v1182_v57 = vmul.f32 %v1042_v56, %v4302_v3  ;;  %v1045_v62 = vadd.f32 0.5, %v1013_v63 }
 0x191   : > { %v1150_v8 = vrot.slane %v1149_v61, 2  ;;  %v1210_v55 = vadd.f32 %v1209_v48, %v1179_v12  ;;  %v1248_v41 = vadd.f32 %v1247_v34, %v4299_v6  ;;  %v1183_v15 = vmul.f32 %v1043_v7, %v4303_v45 }
 0x192   : > { %v1115_v49 = vadd.f32 %v1114_v54, %v1113_v11  ;;  %v1046_v23 = vadd.f32 0.5, %v1014_v9  ;;  %v1184_v31 = vmul.f32 %v1044_v43, %v4304_v26  ;;  %v1185_v60 = vmul.f32 %v1045_v62, %v4305_v47 }
 0x193   : > { %v1151_v25 = vadd.f32 %v1150_v8, %v1149_v61  ;;  %v1211_v24 = vadd.f32 %v1210_v55, %v1180_v14  ;;  %v1249_v58 = vadd.f32 %v1248_v41, %v4300_v28 }
 0x194   : > { %1116 = vst [vmem:[%s3691_s28] sm:$0x1] %v1115_v49  ;;  %v1186_v38 = vmul.f32 %v1046_v23, %v4306_v59 }
 0x195   : > { %v1152_v35 = vrot.slane %v1151_v25, 1  ;;  %v1212_v50 = vadd.f32 %v1211_v24, %v1181_v46  ;;  %v1250_v0 = vadd.f32 %v1249_v58, %v4301_v18 }
 0x197   : > { %v1153_v10 = vadd.f32 %v1152_v35, %v1151_v25  ;;  %v1213_v32 = vadd.f32 %v1212_v50, %v1182_v57  ;;  %v1251_v51 = vadd.f32 %v1250_v0, %v4302_v3 }
 0x199   : > { %1154 = vst [vmem:[%s3691_s28 + $0x1] sm:$0x1] %v1153_v10  ;;  %v1214_v22 = vadd.f32 %v1213_v32, %v1183_v15  ;;  %v1252_v16 = vadd.f32 %v1251_v51, %v4303_v45 }
 0x19b   : > { %v1215_v53 = vadd.f32 %v1214_v22, %v1184_v31  ;;  %v1253_v27 = vadd.f32 %v1252_v16, %v4304_v26 }
 0x19d   : > { %v1216_v4 = vadd.f32 %v1215_v53, %v1185_v60  ;;  %v1254_v5 = vadd.f32 %v1253_v27, %v4305_v47 }
 0x19f   : > { %v1217_v13 = vadd.f32 %v1216_v4, %v1186_v38  ;;  %v1255_v52 = vadd.f32 %v1254_v5, %v4306_v59 }
 0x1a1   : > { %v1218_v1 = vrot.slane %v1217_v13, 4  ;;  %v1256_v42 = vrot.slane %v1255_v52, 4 }
 0x1a3   : > { %v1219_v20 = vadd.f32 %v1218_v1, %v1217_v13  ;;  %v1257_v44 = vadd.f32 %v1256_v42, %v1255_v52 }
 0x1a5   : > { %v1220_v17 = vrot.slane %v1219_v20, 2  ;;  %v1258_v33 = vrot.slane %v1257_v44, 2 }
 0x1a7   : > { %v1221_v2 = vadd.f32 %v1220_v17, %v1219_v20  ;;  %v1259_v29 = vadd.f32 %v1258_v33, %v1257_v44 }
 0x1a9   : > { %v1222_v39 = vrot.slane %v1221_v2, 1  ;;  %v1260_v37 = vrot.slane %v1259_v29, 1 }
 0x1ab   : > { %v1223_v30 = vadd.f32 %v1222_v39, %v1221_v2  ;;  %v1261_v61 = vadd.f32 %v1260_v37, %v1259_v29 }
 0x1ad   : > { %1224 = vst [vmem:[%s3691_s28 + $0x2] sm:$0x1] %v1223_v30 }
 0x1ae   : > { %1262 = vst [vmem:[%s3691_s28 + $0x3] sm:$0x1] %v1261_v61 }
 0x1af   : > { %1971 = shalt.err (!%p1968_p13)
}
 0x1b0   : > { %1654 = dma.vmem_to_hbm [thread:$0]  (%p2093_p9), %s1277_s19, 64, %s1279_s4, %s1264_s16  }
 0x1b1 PF: > { %s1290_s26 = sand.u32 1, %s2002_s12   ;;  %p4307_p2 = scmp.ne.s32.totalorder %s3894_s25, 0 }
 0x1b2   : > { %p4308_p3 = scmp.ge.s32.totalorder %s2014_s15, 2  ;;  %s1291_s10 = scalar_lea.sflag [#allocation4], %s1290_s26 }
 0x1b4   : > { %p1657_p11 = pnand %p4308_p3, %p4307_p2 }
 0x1b6   : > { %p1658_p4 = pneg %p1657_p11 }
 0x1b8   : > { %1997 = dma.done.wait (%p1658_p4), %s1291_s10, 64  }
 0x1b9   : > { %1999 = vsyncadd (%p1658_p4), %s1291_s10, 4294967232  ;;  %p19_p7 = scmp.ge.s32.totalorder %s2070_s18, 4   ;;  %s4309_s12 = smov %s2006_s13 }
 0x1ba   : > { %s4310_s13 = smov %s2010_s14  ;;  %s4311_s14 = smov %s2082_s21 }
 0x1bb   : > { %s4312_s15 = smov %s2070_s18  ;;  %21 = sbr.rel (!%p19_p7) target bundleno = 7 (0x7), region = 101 }
 0x1c0   :  { %1297 = vsyncpa [#allocation3], 1 }
 0x1c1   :  { %1299 = vsyncpa [#allocation3 + $0x1], 1 }
 0x1c2   :  { %1300 = vsyncpa [#allocation6], 1 }
 0x1c3   :  { %1302 = vsyncpa [#allocation6 + $0x1], 1 }
 0x1c4   :  { %1303 = vsyncpa [#allocation4], 1 }
 0x1c5   :  { %1305 = vsyncpa [#allocation4 + $0x1], 1 }

</bundles_post_ra>
